<compile_context>
chip_gen: v7x
topology: tpu7x:2x2x1
jax: 0.10.0
libtpu: 0.0.40
codegen_flags: <defaults>
</compile_context>

<pallas_src>
import functools

import jax
import jax.numpy as jnp
from jax.experimental import pallas as pl
from jax.experimental.pallas import tpu as pltpu

NEG_SLOPE = 0.1
STRUCTURE = (64, 'M', 128, 'M', 256)


def _lrelu(x):
    return jnp.where(x >= 0, x, NEG_SLOPE * x)


# ---------------------------------------------------------------------------
# Fused conv/pool stack: one sample per grid step, all intermediates in VMEM.
# The input conv runs channels-first (input arrives lane-major), the running
# 5-max of the first pool is transposed once to channels-last; from there the
# whole stack stays (L, C): pools decimate along sublanes, convs are single
# deep-K bf16 im2col matmuls with lane-dense (multiple-of-128) outputs.
# ---------------------------------------------------------------------------
def _conv3_lrelu_cl(v, w_ref, b_ref):
    """'same' Conv1d(k=3) + LeakyReLU, channels-last.
    v: (L, C) f32, w_ref: (3*C, Cout) bf16 (tap-major rows), b_ref: (1, Cout)."""
    L, C = v.shape
    z = jnp.zeros((1, C), v.dtype)
    t_prev = jnp.concatenate([z, v[:L - 1, :]], axis=0)      # h[l-1] (zero pad)
    t_next = jnp.concatenate([v[1:, :], z], axis=0)          # h[l+1] (zero pad)
    cols = jnp.concatenate([t_prev, v, t_next], axis=1).astype(jnp.bfloat16)
    y = jnp.dot(cols, w_ref[...], preferred_element_type=jnp.float32)
    return _lrelu(y + b_ref[...])


def _maxpool5s2_cl(v, scratch, L, Lout):
    """MaxPool1d(5, stride 2) along sublanes. v: (L, C); scratch: (L-4, C)."""
    Lr = L - 4
    r = v[0:Lr, :]
    for j in range(1, 5):                    # running 5-max, unit-stride slices
        r = jnp.maximum(r, v[j:j + Lr, :])
    scratch[...] = r
    return scratch[pl.ds(0, Lout, 2), :]     # stride-2 sublane decimation


def conv_stack_kernel(x_ref, w1_ref, b1_ref, w2_ref, b2_ref, w3_ref, b3_ref,
                      w4_ref, b4_ref, o_ref, pool0_s, pool1_s, pool2_s,
                      *, L0, L1, L2, L3):
    # ---- input conv (Cin=1): channels-first VPU broadcast MACs ----
    x = x_ref[0]                                             # (1, L0) f32
    z1 = jnp.zeros((1, 1), jnp.float32)
    xl = jnp.concatenate([z1, x[:, :L0 - 1]], axis=1)        # x[l-1]
    xr = jnp.concatenate([x[:, 1:], z1], axis=1)             # x[l+1]
    y = (w1_ref[:, 0:1] * xl + w1_ref[:, 1:2] * x + w1_ref[:, 2:3] * xr
         + b1_ref[...])                                      # (C1, L0)
    # input_layer order: Conv -> MaxPool(5,2) -> LeakyReLU
    Lr0 = L0 - 4
    r = y[:, 0:Lr0]
    for j in range(1, 5):
        r = jnp.maximum(r, y[:, j:j + Lr0])
    pool0_s[...] = jnp.transpose(r)                          # once: -> (Lr0, C1)
    h = _lrelu(pool0_s[pl.ds(0, L1, 2), :])                  # (L1, C1)
    # ---- hidden stack (channels-last) ----
    h = _conv3_lrelu_cl(h, w2_ref, b2_ref)                   # (L1, C2)
    h = _maxpool5s2_cl(h, pool1_s, L1, L2)                   # (L2, C2)
    h = _conv3_lrelu_cl(h, w3_ref, b3_ref)                   # (L2, C3)
    h = _maxpool5s2_cl(h, pool2_s, L2, L3)                   # (L3, C3)
    h = _conv3_lrelu_cl(h, w4_ref, b4_ref)                   # (L3, C4)
    o_ref[0] = h.astype(o_ref.dtype)                         # lane-dense (C4=256)


def conv_stack(x, params):
    B, cin, L0 = x.shape
    assert cin == 1
    L1 = (L0 - 5) // 2 + 1
    L2 = (L1 - 5) // 2 + 1
    L3 = (L2 - 5) // 2 + 1

    def reform(w):  # (Cout, Cin, 3) -> (3*Cin, Cout), tap-major rows, bf16
        co, ci, k = w.shape
        return jnp.transpose(w, (2, 1, 0)).reshape(k * ci, co).astype(jnp.bfloat16)

    convs = [l for l in params['hidden'] if l['type'] == 'conv']
    w1 = params['in_w'][:, 0, :]                      # (C1, 3) f32 (VPU path)
    b1 = params['in_b'].reshape(-1, 1)                # (C1, 1)
    w2r, b2 = reform(convs[0]['w']), convs[0]['b'].reshape(1, -1)
    w3r, b3 = reform(convs[1]['w']), convs[1]['b'].reshape(1, -1)
    w4r, b4 = reform(convs[2]['w']), convs[2]['b'].reshape(1, -1)
    C1, C2, C3, C4 = w1.shape[0], w2r.shape[1], w3r.shape[1], w4r.shape[1]

    kernel = functools.partial(conv_stack_kernel, L0=L0, L1=L1, L2=L2, L3=L3)
    flops = 2 * B * (C1 * 3 * L0 + C2 * 3 * C1 * L1
                     + C3 * 3 * C2 * L2 + C4 * 3 * C3 * L3)
    bytes_accessed = (B * L0 * 4 + B * L3 * C4 * 4 + C1 * 3 * 4
                      + (3 * C1 * C2 + 3 * C2 * C3 + 3 * C3 * C4) * 2)

    return pl.pallas_call(
        kernel,
        out_shape=jax.ShapeDtypeStruct((B, L3, C4), jnp.float32),
        grid=(B,),
        in_specs=[
            pl.BlockSpec((1, 1, L0), lambda i: (i, 0, 0)),
            pl.BlockSpec((C1, 3), lambda i: (0, 0)),
            pl.BlockSpec((C1, 1), lambda i: (0, 0)),
            pl.BlockSpec((3 * C1, C2), lambda i: (0, 0)),
            pl.BlockSpec((1, C2), lambda i: (0, 0)),
            pl.BlockSpec((3 * C2, C3), lambda i: (0, 0)),
            pl.BlockSpec((1, C3), lambda i: (0, 0)),
            pl.BlockSpec((3 * C3, C4), lambda i: (0, 0)),
            pl.BlockSpec((1, C4), lambda i: (0, 0)),
        ],
        out_specs=pl.BlockSpec((1, L3, C4), lambda i: (i, 0, 0)),
        scratch_shapes=[
            pltpu.VMEM((L0 - 4, C1), jnp.float32),   # pool0 running-max
            pltpu.VMEM((L1 - 4, C2), jnp.float32),   # pool1 running-max
            pltpu.VMEM((L2 - 4, C3), jnp.float32),   # pool2 running-max
        ],
        compiler_params=pltpu.CompilerParams(dimension_semantics=("parallel",)),
        cost_estimate=pl.CostEstimate(flops=flops, transcendentals=0,
                                      bytes_accessed=bytes_accessed),
    )(x, w1, b1, w2r, b2, w3r, b3, w4r, b4)   # (B, L3, C4) channels-last


# ---------------------------------------------------------------------------
# MLP head.  fc1 is K-tiled over Din with an f32 VMEM accumulator and the
# output columns split in two (parallel axis -> both v7x TCs stream half of
# the ~195 MB bf16 weight).  fc2+fc3 are a tiny separate fused kernel.
# ---------------------------------------------------------------------------
def fc1_kernel(x_ref, w_ref, b_ref, o_ref, acc_ref):
    k = pl.program_id(1)

    @pl.when(k == 0)
    def _init():
        acc_ref[...] = jnp.zeros_like(acc_ref)

    acc_ref[...] += jnp.dot(x_ref[...], w_ref[...],
                            preferred_element_type=jnp.float32)

    @pl.when(k == pl.num_programs(1) - 1)
    def _finish():
        o_ref[...] = _lrelu(acc_ref[...] + b_ref[...])


def head_kernel(h_ref, w2_ref, b2_ref, w3_ref, b3_ref, o_ref):
    h1 = h_ref[...].astype(jnp.bfloat16)
    h2 = _lrelu(jnp.dot(h1, w2_ref[...],
                        preferred_element_type=jnp.float32) + b2_ref[...])
    o_ref[...] = (jnp.dot(h2.astype(jnp.bfloat16), w3_ref[...],
                          preferred_element_type=jnp.float32)
                  + b3_ref[...]).astype(o_ref.dtype)


def mlp_head(xf, params, *, tk_cap=8192):
    # xf: (B, Din) f32.  tk_cap: max fc1 K-tile (with th=512 and Buffered(3)
    # the weight tiles stay < 24 MB, inside the scoped-VMEM default on all of
    # v5e/v6e/v7x; raise further on v5e/v6e if desired).
    B, Din = xf.shape
    w1, w2, w3 = params['fc1_w'], params['fc2_w'], params['fc3_w']
    b1 = params['fc1_b'].reshape(1, -1)
    b2 = params['fc2_b'].reshape(1, -1)
    b3 = params['fc3_b'].reshape(1, -1)
    H, Nc = w1.shape[1], w3.shape[1]

    # Split fc1's output columns so the parallel grid axis spans >= 2.
    th = 512 if (H % 512 == 0 and H > 512) else H
    nh = H // th

    # K tiling: Din = 256*L3 is a multiple of 128, so pick the largest
    # 128-multiple divisor <= tk_cap -> no per-call padding of the weight.
    if Din % 128 == 0:
        units = Din // 128
        m = max(mm for mm in range(1, max(1, tk_cap // 128) + 1)
                if units % mm == 0)
        tk = 128 * m
        xb, w1b = xf.astype(jnp.bfloat16), w1
    else:
        # TODO(synk): unreachable for this model; pad K once here if needed.
        tk = min(max(128, (tk_cap // 128) * 128), ((Din + 127) // 128) * 128)
        Dp = ((Din + tk - 1) // tk) * tk
        xb = jnp.pad(xf.astype(jnp.bfloat16), ((0, 0), (0, Dp - Din)))
        w1b = jnp.pad(w1, ((0, Dp - Din), (0, 0)))
    kt = xb.shape[1] // tk

    h1 = pl.pallas_call(
        fc1_kernel,
        out_shape=jax.ShapeDtypeStruct((B, H), jnp.float32),
        grid=(nh, kt),                                 # (out-col tiles, K tiles)
        in_specs=[
            pl.BlockSpec((B, tk), lambda h, k: (0, k)),
            pl.BlockSpec((tk, th), lambda h, k: (k, h),
                         pipeline_mode=pl.Buffered(3)),
            pl.BlockSpec((1, th), lambda h, k: (0, h)),
        ],
        out_specs=pl.BlockSpec((B, th), lambda h, k: (0, h)),
        scratch_shapes=[pltpu.VMEM((B, th), jnp.float32)],
        compiler_params=pltpu.CompilerParams(
            dimension_semantics=("parallel", "arbitrary")),
        cost_estimate=pl.CostEstimate(
            flops=2 * B * Din * H, transcendentals=0,
            bytes_accessed=Din * H * 2 + B * Din * 2 + B * H * 4),
    )(xb, w1b, b1)

    return pl.pallas_call(
        head_kernel,
        out_shape=jax.ShapeDtypeStruct((B, Nc), jnp.float32),
        cost_estimate=pl.CostEstimate(
            flops=2 * B * H * (H + Nc), transcendentals=0,
            bytes_accessed=H * H * 2 + H * Nc * 2 + B * (2 * H + Nc) * 4),
    )(h1, w2, b2, w3, b3)


# ---------------------------------------------------------------------------
# Parameter construction (deterministic, PyTorch-default-style uniform init).
# ---------------------------------------------------------------------------
def _uniform(key, shape, fan_in):
    bound = 1.0 / jnp.sqrt(jnp.float32(fan_in))
    return jax.random.uniform(key, shape, jnp.float32, -bound, bound)


def build_params(key, seq_len, output_channels=32, n_classes=2):
    keys = iter(jax.random.split(key, 16))
    params = {}
    params['in_w'] = _uniform(next(keys), (output_channels, 1, 3), 1 * 3)
    params['in_b'] = _uniform(next(keys), (output_channels,), 1 * 3)

    L = (seq_len - 5) // 2 + 1          # after input-layer MaxPool(5,2)
    in_ch = output_channels
    hidden = []
    for item in STRUCTURE:
        if item == 'M':
            hidden.append({'type': 'pool'})
            L = (L - 5) // 2 + 1
        else:
            hidden.append({
                'type': 'conv',
                'w': _uniform(next(keys), (item, in_ch, 3), in_ch * 3),
                'b': _uniform(next(keys), (item,), in_ch * 3),
            })
            in_ch = item
    params['hidden'] = hidden
    flat_dim = in_ch * L                # == self.channels in the PyTorch module

    # fc weights pre-cast to bf16 at build time (no per-call prep); biases f32.
    params['fc1_w'] = _uniform(next(keys), (flat_dim, 1024), flat_dim).astype(jnp.bfloat16)
    params['fc1_b'] = _uniform(next(keys), (1024,), flat_dim)
    params['fc2_w'] = _uniform(next(keys), (1024, 1024), 1024).astype(jnp.bfloat16)
    params['fc2_b'] = _uniform(next(keys), (1024,), 1024)
    params['fc3_w'] = _uniform(next(keys), (1024, n_classes), 1024).astype(jnp.bfloat16)
    params['fc3_b'] = _uniform(next(keys), (n_classes,), 1024)
    return params


# ---------------------------------------------------------------------------
# Full forward pass (three fused Pallas kernels + tiny XLA layout glue).
# ---------------------------------------------------------------------------
def network_forward(x, params):
    B = x.shape[0]
    y = conv_stack(x, params)                          # (B, L3, 256) channels-last
    # PyTorch flattening is channel-major: (B, C, L) -> (B, C*L).
    xf = jnp.transpose(y, (0, 2, 1)).reshape(B, -1)
    return mlp_head(xf, params)                        # (B, n_classes)


# ---------------------------------------------------------------------------
# Pure-JAX reference (for correctness check only).
# ---------------------------------------------------------------------------
def reference_forward(x, params):
    def conv(x, w, b, lrelu):
        y = jax.lax.conv_general_dilated(
            x, w, window_strides=(1,), padding=[(1, 1)],
            dimension_numbers=('NCH', 'OIH', 'NCH'))
        y = y + b[None, :, None]
        return _lrelu(y) if lrelu else y

    def pool(x, lrelu):
        y = jax.lax.reduce_window(x, -jnp.inf, jax.lax.max,
                                  (1, 1, 5), (1, 1, 2), 'VALID')
        return _lrelu(y) if lrelu else y

    B = x.shape[0]
    h = conv(x, params['in_w'], params['in_b'], False)
    h = pool(h, True)
    for layer in params['hidden']:
        if layer['type'] == 'conv':
            h = conv(h, layer['w'], layer['b'], True)
        else:
            h = pool(h, False)
    hf = h.reshape(B, -1).astype(jnp.bfloat16)
    a1 = _lrelu(jnp.dot(hf, params['fc1_w'],
                        preferred_element_type=jnp.float32) + params['fc1_b'])
    a2 = _lrelu(jnp.dot(a1.astype(jnp.bfloat16), params['fc2_w'],
                        preferred_element_type=jnp.float32) + params['fc2_b'])
    out = jnp.dot(a2.astype(jnp.bfloat16), params['fc3_w'],
                  preferred_element_type=jnp.float32) + params['fc3_b']
    return out


if __name__ == "__main__":
    key = jax.random.PRNGKey(0)
    k_x, k_p = jax.random.split(key)

    BATCH, SEQ = 2, 80                   # small stand-in for the 3000-sample EEG trace
    x = jax.random.normal(k_x, (BATCH, 1, SEQ), jnp.float32)
    params = build_params(k_p, SEQ)

    out = jax.block_until_ready(network_forward(x, params))
    ref = jax.block_until_ready(reference_forward(x, params))

    assert out.shape == (BATCH, 2), out.shape
    assert jnp.allclose(out, ref, atol=3e-2, rtol=3e-2), (out, ref)

    print("KERNEL_OK")
</pallas_src>

<mosaic_0001>
module attributes {stable_mosaic.version = 11 : i64} {
  func.func @conv_stack_kernel(%arg0: i32, %arg1: memref<1x1x80xf32, #tpu.memory_space<vmem>>, %arg2: memref<32x3xf32, #tpu.memory_space<vmem>>, %arg3: memref<32x1xf32, #tpu.memory_space<vmem>>, %arg4: memref<96x64xbf16, #tpu.memory_space<vmem>>, %arg5: memref<1x64xf32, #tpu.memory_space<vmem>>, %arg6: memref<192x128xbf16, #tpu.memory_space<vmem>>, %arg7: memref<1x128xf32, #tpu.memory_space<vmem>>, %arg8: memref<384x256xbf16, #tpu.memory_space<vmem>>, %arg9: memref<1x256xf32, #tpu.memory_space<vmem>>, %arg10: memref<1x7x256xf32, #tpu.memory_space<vmem>>, %arg11: memref<76x32xf32, #tpu.memory_space<vmem>>, %arg12: memref<34x64xf32, #tpu.memory_space<vmem>>, %arg13: memref<13x128xf32, #tpu.memory_space<vmem>>) attributes {dimension_semantics = [#tpu.dimension_semantics<parallel>], iteration_bounds = array<i64: 2>, scalar_prefetch = 0 : i64, scratch_operands = 3 : i64, tpu.core_type = #tpu.core_type<tc>, window_params = [{transform_indices = @transform_0, window_bounds = array<i64: 1, 1, 80>}, {pipeline_mode = #tpu.pipeline_mode<synchronous>, transform_indices = @transform_1, window_bounds = array<i64: 32, 3>}, {pipeline_mode = #tpu.pipeline_mode<synchronous>, transform_indices = @transform_2, window_bounds = array<i64: 32, 1>}, {pipeline_mode = #tpu.pipeline_mode<synchronous>, transform_indices = @transform_3, window_bounds = array<i64: 96, 64>}, {pipeline_mode = #tpu.pipeline_mode<synchronous>, transform_indices = @transform_4, window_bounds = array<i64: 1, 64>}, {pipeline_mode = #tpu.pipeline_mode<synchronous>, transform_indices = @transform_5, window_bounds = array<i64: 192, 128>}, {pipeline_mode = #tpu.pipeline_mode<synchronous>, transform_indices = @transform_6, window_bounds = array<i64: 1, 128>}, {pipeline_mode = #tpu.pipeline_mode<synchronous>, transform_indices = @transform_7, window_bounds = array<i64: 384, 256>}, {pipeline_mode = #tpu.pipeline_mode<synchronous>, transform_indices = @transform_8, window_bounds = array<i64: 1, 256>}, {transform_indices = @transform_9, window_bounds = array<i64: 1, 7, 256>}]} {
    %c0 = arith.constant 0 : index
    %c0_0 = arith.constant 0 : index
    %c0_1 = arith.constant 0 : index
    %0 = vector.load %arg1[%c0, %c0_0, %c0_1] : memref<1x1x80xf32, #tpu.memory_space<vmem>>, vector<1x1x80xf32>
    %1 = vector.shape_cast %0 : vector<1x1x80xf32> to vector<1x80xf32>
    %cst = arith.constant 0.000000e+00 : f32
    %2 = vector.broadcast %cst : f32 to vector<1x1xf32>
    %3 = vector.extract_strided_slice %1 {offsets = [0, 0], sizes = [1, 79], strides = [1, 1]} : vector<1x80xf32> to vector<1x79xf32>
    %4 = tpu.concatenate %2, %3 in 1 : vector<1x1xf32>, vector<1x79xf32> -> vector<1x80xf32>
    %5 = vector.extract_strided_slice %1 {offsets = [0, 1], sizes = [1, 79], strides = [1, 1]} : vector<1x80xf32> to vector<1x79xf32>
    %6 = tpu.concatenate %5, %2 in 1 : vector<1x79xf32>, vector<1x1xf32> -> vector<1x80xf32>
    %c0_2 = arith.constant 0 : index
    %c0_3 = arith.constant 0 : index
    %7 = vector.load %arg2[%c0_2, %c0_3] : memref<32x3xf32, #tpu.memory_space<vmem>>, vector<32x1xf32>
    %8 = vector.broadcast %7 : vector<32x1xf32> to vector<32x80xf32>
    %9 = vector.broadcast %4 : vector<1x80xf32> to vector<32x80xf32>
    %10 = arith.mulf %8, %9 : vector<32x80xf32>
    %c0_4 = arith.constant 0 : index
    %c1 = arith.constant 1 : index
    %11 = vector.load %arg2[%c0_4, %c1] : memref<32x3xf32, #tpu.memory_space<vmem>>, vector<32x1xf32>
    %12 = vector.broadcast %11 : vector<32x1xf32> to vector<32x80xf32>
    %13 = vector.broadcast %1 : vector<1x80xf32> to vector<32x80xf32>
    %14 = arith.mulf %12, %13 : vector<32x80xf32>
    %15 = arith.addf %10, %14 : vector<32x80xf32>
    %c0_5 = arith.constant 0 : index
    %c2 = arith.constant 2 : index
    %16 = vector.load %arg2[%c0_5, %c2] : memref<32x3xf32, #tpu.memory_space<vmem>>, vector<32x1xf32>
    %17 = vector.broadcast %16 : vector<32x1xf32> to vector<32x80xf32>
    %18 = vector.broadcast %6 : vector<1x80xf32> to vector<32x80xf32>
    %19 = arith.mulf %17, %18 : vector<32x80xf32>
    %20 = arith.addf %15, %19 : vector<32x80xf32>
    %c0_6 = arith.constant 0 : index
    %c0_7 = arith.constant 0 : index
    %21 = vector.load %arg3[%c0_6, %c0_7] : memref<32x1xf32, #tpu.memory_space<vmem>>, vector<32x1xf32>
    %22 = vector.broadcast %21 : vector<32x1xf32> to vector<32x80xf32>
    %23 = arith.addf %20, %22 : vector<32x80xf32>
    %24 = vector.extract_strided_slice %23 {offsets = [0, 0], sizes = [32, 76], strides = [1, 1]} : vector<32x80xf32> to vector<32x76xf32>
    %25 = vector.extract_strided_slice %23 {offsets = [0, 1], sizes = [32, 76], strides = [1, 1]} : vector<32x80xf32> to vector<32x76xf32>
    %26 = arith.maximumf %24, %25 : vector<32x76xf32>
    %27 = vector.extract_strided_slice %23 {offsets = [0, 2], sizes = [32, 76], strides = [1, 1]} : vector<32x80xf32> to vector<32x76xf32>
    %28 = arith.maximumf %26, %27 : vector<32x76xf32>
    %29 = vector.extract_strided_slice %23 {offsets = [0, 3], sizes = [32, 76], strides = [1, 1]} : vector<32x80xf32> to vector<32x76xf32>
    %30 = arith.maximumf %28, %29 : vector<32x76xf32>
    %31 = vector.extract_strided_slice %23 {offsets = [0, 4], sizes = [32, 76], strides = [1, 1]} : vector<32x80xf32> to vector<32x76xf32>
    %32 = arith.maximumf %30, %31 : vector<32x76xf32>
    %33 = tpu.transpose %32, [1, 0] : vector<32x76xf32> -> vector<76x32xf32>
    %c0_8 = arith.constant 0 : index
    %c0_9 = arith.constant 0 : index
    %34 = vector.load %arg11[%c0_8, %c0_9] : memref<76x32xf32, #tpu.memory_space<vmem>>, vector<76x32xf32>
    tpu.vector_store %arg11[%c0_8, %c0_9], %33 {strides = array<i32>} : memref<76x32xf32, #tpu.memory_space<vmem>>, vector<76x32xf32>,
    %c0_10 = arith.constant 0 : index
    %c0_11 = arith.constant 0 : index
    %35 = tpu.strided_load %arg11[%c0_10, %c0_11] {strides = array<i32: 2, 1>} : memref<76x32xf32, #tpu.memory_space<vmem>>, vector<38x32xf32>
    %cst_12 = arith.constant 0.000000e+00 : f32
    %36 = vector.broadcast %cst_12 : f32 to vector<38x32xf32>
    %37 = arith.cmpf oge, %35, %36 : vector<38x32xf32>
    %cst_13 = arith.constant 1.000000e-01 : f32
    %38 = vector.broadcast %cst_13 : f32 to vector<38x32xf32>
    %39 = arith.mulf %38, %35 : vector<38x32xf32>
    %40 = arith.select %37, %35, %39 : vector<38x32xi1>, vector<38x32xf32>
    %cst_14 = arith.constant 0.000000e+00 : f32
    %41 = vector.broadcast %cst_14 : f32 to vector<1x32xf32>
    %42 = vector.extract_strided_slice %40 {offsets = [0, 0], sizes = [37, 32], strides = [1, 1]} : vector<38x32xf32> to vector<37x32xf32>
    %43 = tpu.concatenate %41, %42 in 0 : vector<1x32xf32>, vector<37x32xf32> -> vector<38x32xf32>
    %44 = vector.extract_strided_slice %40 {offsets = [1, 0], sizes = [37, 32], strides = [1, 1]} : vector<38x32xf32> to vector<37x32xf32>
    %45 = tpu.concatenate %44, %41 in 0 : vector<37x32xf32>, vector<1x32xf32> -> vector<38x32xf32>
    %46 = tpu.concatenate %43, %40, %45 in 1 : vector<38x32xf32>, vector<38x32xf32>, vector<38x32xf32> -> vector<38x96xf32>
    %47 = arith.truncf %46 : vector<38x96xf32> to vector<38x96xbf16>
    %c0_15 = arith.constant 0 : index
    %c0_16 = arith.constant 0 : index
    %48 = vector.load %arg4[%c0_15, %c0_16] : memref<96x64xbf16, #tpu.memory_space<vmem>>, vector<96x64xbf16>
    %cst_17 = arith.constant dense<0.000000e+00> : vector<38x64xf32>
    %49 = tpu.matmul %47, %48, %cst_17 {dimension_numbers = #tpu.dot_dimension_numbers<[1], [0], [0], [1], [0, 0, 1, 1], [], []>} : vector<38x96xbf16>, vector<96x64xbf16>, vector<38x64xf32> -> vector<38x64xf32>
    %c0_18 = arith.constant 0 : index
    %c0_19 = arith.constant 0 : index
    %50 = vector.load %arg5[%c0_18, %c0_19] : memref<1x64xf32, #tpu.memory_space<vmem>>, vector<1x64xf32>
    %51 = vector.broadcast %50 : vector<1x64xf32> to vector<38x64xf32>
    %52 = arith.addf %49, %51 : vector<38x64xf32>
    %cst_20 = arith.constant 0.000000e+00 : f32
    %53 = vector.broadcast %cst_20 : f32 to vector<38x64xf32>
    %54 = arith.cmpf oge, %52, %53 : vector<38x64xf32>
    %cst_21 = arith.constant 1.000000e-01 : f32
    %55 = vector.broadcast %cst_21 : f32 to vector<38x64xf32>
    %56 = arith.mulf %55, %52 : vector<38x64xf32>
    %57 = arith.select %54, %52, %56 : vector<38x64xi1>, vector<38x64xf32>
    %58 = vector.extract_strided_slice %57 {offsets = [0, 0], sizes = [34, 64], strides = [1, 1]} : vector<38x64xf32> to vector<34x64xf32>
    %59 = vector.extract_strided_slice %57 {offsets = [1, 0], sizes = [34, 64], strides = [1, 1]} : vector<38x64xf32> to vector<34x64xf32>
    %60 = arith.maximumf %58, %59 : vector<34x64xf32>
    %61 = vector.extract_strided_slice %57 {offsets = [2, 0], sizes = [34, 64], strides = [1, 1]} : vector<38x64xf32> to vector<34x64xf32>
    %62 = arith.maximumf %60, %61 : vector<34x64xf32>
    %63 = vector.extract_strided_slice %57 {offsets = [3, 0], sizes = [34, 64], strides = [1, 1]} : vector<38x64xf32> to vector<34x64xf32>
    %64 = arith.maximumf %62, %63 : vector<34x64xf32>
    %65 = vector.extract_strided_slice %57 {offsets = [4, 0], sizes = [34, 64], strides = [1, 1]} : vector<38x64xf32> to vector<34x64xf32>
    %66 = arith.maximumf %64, %65 : vector<34x64xf32>
    %c0_22 = arith.constant 0 : index
    %c0_23 = arith.constant 0 : index
    %67 = vector.load %arg12[%c0_22, %c0_23] : memref<34x64xf32, #tpu.memory_space<vmem>>, vector<34x64xf32>
    tpu.vector_store %arg12[%c0_22, %c0_23], %66 {strides = array<i32>} : memref<34x64xf32, #tpu.memory_space<vmem>>, vector<34x64xf32>,
    %c0_24 = arith.constant 0 : index
    %c0_25 = arith.constant 0 : index
    %68 = tpu.strided_load %arg12[%c0_24, %c0_25] {strides = array<i32: 2, 1>} : memref<34x64xf32, #tpu.memory_space<vmem>>, vector<17x64xf32>
    %cst_26 = arith.constant 0.000000e+00 : f32
    %69 = vector.broadcast %cst_26 : f32 to vector<1x64xf32>
    %70 = vector.extract_strided_slice %68 {offsets = [0, 0], sizes = [16, 64], strides = [1, 1]} : vector<17x64xf32> to vector<16x64xf32>
    %71 = tpu.concatenate %69, %70 in 0 : vector<1x64xf32>, vector<16x64xf32> -> vector<17x64xf32>
    %72 = vector.extract_strided_slice %68 {offsets = [1, 0], sizes = [16, 64], strides = [1, 1]} : vector<17x64xf32> to vector<16x64xf32>
    %73 = tpu.concatenate %72, %69 in 0 : vector<16x64xf32>, vector<1x64xf32> -> vector<17x64xf32>
    %74 = tpu.concatenate %71, %68, %73 in 1 : vector<17x64xf32>, vector<17x64xf32>, vector<17x64xf32> -> vector<17x192xf32>
    %75 = arith.truncf %74 : vector<17x192xf32> to vector<17x192xbf16>
    %c0_27 = arith.constant 0 : index
    %c0_28 = arith.constant 0 : index
    %76 = vector.load %arg6[%c0_27, %c0_28] : memref<192x128xbf16, #tpu.memory_space<vmem>>, vector<192x128xbf16>
    %cst_29 = arith.constant dense<0.000000e+00> : vector<17x128xf32>
    %77 = tpu.matmul %75, %76, %cst_29 {dimension_numbers = #tpu.dot_dimension_numbers<[1], [0], [0], [1], [0, 0, 1, 1], [], []>} : vector<17x192xbf16>, vector<192x128xbf16>, vector<17x128xf32> -> vector<17x128xf32>
    %c0_30 = arith.constant 0 : index
    %c0_31 = arith.constant 0 : index
    %78 = vector.load %arg7[%c0_30, %c0_31] : memref<1x128xf32, #tpu.memory_space<vmem>>, vector<1x128xf32>
    %79 = vector.broadcast %78 : vector<1x128xf32> to vector<17x128xf32>
    %80 = arith.addf %77, %79 : vector<17x128xf32>
    %cst_32 = arith.constant 0.000000e+00 : f32
    %81 = vector.broadcast %cst_32 : f32 to vector<17x128xf32>
    %82 = arith.cmpf oge, %80, %81 : vector<17x128xf32>
    %cst_33 = arith.constant 1.000000e-01 : f32
    %83 = vector.broadcast %cst_33 : f32 to vector<17x128xf32>
    %84 = arith.mulf %83, %80 : vector<17x128xf32>
    %85 = arith.select %82, %80, %84 : vector<17x128xi1>, vector<17x128xf32>
    %86 = vector.extract_strided_slice %85 {offsets = [0, 0], sizes = [13, 128], strides = [1, 1]} : vector<17x128xf32> to vector<13x128xf32>
    %87 = vector.extract_strided_slice %85 {offsets = [1, 0], sizes = [13, 128], strides = [1, 1]} : vector<17x128xf32> to vector<13x128xf32>
    %88 = arith.maximumf %86, %87 : vector<13x128xf32>
    %89 = vector.extract_strided_slice %85 {offsets = [2, 0], sizes = [13, 128], strides = [1, 1]} : vector<17x128xf32> to vector<13x128xf32>
    %90 = arith.maximumf %88, %89 : vector<13x128xf32>
    %91 = vector.extract_strided_slice %85 {offsets = [3, 0], sizes = [13, 128], strides = [1, 1]} : vector<17x128xf32> to vector<13x128xf32>
    %92 = arith.maximumf %90, %91 : vector<13x128xf32>
    %93 = vector.extract_strided_slice %85 {offsets = [4, 0], sizes = [13, 128], strides = [1, 1]} : vector<17x128xf32> to vector<13x128xf32>
    %94 = arith.maximumf %92, %93 : vector<13x128xf32>
    %c0_34 = arith.constant 0 : index
    %c0_35 = arith.constant 0 : index
    %95 = vector.load %arg13[%c0_34, %c0_35] : memref<13x128xf32, #tpu.memory_space<vmem>>, vector<13x128xf32>
    tpu.vector_store %arg13[%c0_34, %c0_35], %94 {strides = array<i32>} : memref<13x128xf32, #tpu.memory_space<vmem>>, vector<13x128xf32>,
    %c0_36 = arith.constant 0 : index
    %c0_37 = arith.constant 0 : index
    %96 = tpu.strided_load %arg13[%c0_36, %c0_37] {strides = array<i32: 2, 1>} : memref<13x128xf32, #tpu.memory_space<vmem>>, vector<7x128xf32>
    %cst_38 = arith.constant 0.000000e+00 : f32
    %97 = vector.broadcast %cst_38 : f32 to vector<1x128xf32>
    %98 = vector.extract_strided_slice %96 {offsets = [0, 0], sizes = [6, 128], strides = [1, 1]} : vector<7x128xf32> to vector<6x128xf32>
    %99 = tpu.concatenate %97, %98 in 0 : vector<1x128xf32>, vector<6x128xf32> -> vector<7x128xf32>
    %100 = vector.extract_strided_slice %96 {offsets = [1, 0], sizes = [6, 128], strides = [1, 1]} : vector<7x128xf32> to vector<6x128xf32>
    %101 = tpu.concatenate %100, %97 in 0 : vector<6x128xf32>, vector<1x128xf32> -> vector<7x128xf32>
    %102 = tpu.concatenate %99, %96, %101 in 1 : vector<7x128xf32>, vector<7x128xf32>, vector<7x128xf32> -> vector<7x384xf32>
    %103 = arith.truncf %102 : vector<7x384xf32> to vector<7x384xbf16>
    %c0_39 = arith.constant 0 : index
    %c0_40 = arith.constant 0 : index
    %104 = vector.load %arg8[%c0_39, %c0_40] : memref<384x256xbf16, #tpu.memory_space<vmem>>, vector<384x256xbf16>
    %cst_41 = arith.constant dense<0.000000e+00> : vector<7x256xf32>
    %105 = tpu.matmul %103, %104, %cst_41 {dimension_numbers = #tpu.dot_dimension_numbers<[1], [0], [0], [1], [0, 0, 1, 1], [], []>} : vector<7x384xbf16>, vector<384x256xbf16>, vector<7x256xf32> -> vector<7x256xf32>
    %c0_42 = arith.constant 0 : index
    %c0_43 = arith.constant 0 : index
    %106 = vector.load %arg9[%c0_42, %c0_43] : memref<1x256xf32, #tpu.memory_space<vmem>>, vector<1x256xf32>
    %107 = vector.broadcast %106 : vector<1x256xf32> to vector<7x256xf32>
    %108 = arith.addf %105, %107 : vector<7x256xf32>
    %cst_44 = arith.constant 0.000000e+00 : f32
    %109 = vector.broadcast %cst_44 : f32 to vector<7x256xf32>
    %110 = arith.cmpf oge, %108, %109 : vector<7x256xf32>
    %cst_45 = arith.constant 1.000000e-01 : f32
    %111 = vector.broadcast %cst_45 : f32 to vector<7x256xf32>
    %112 = arith.mulf %111, %108 : vector<7x256xf32>
    %113 = arith.select %110, %108, %112 : vector<7x256xi1>, vector<7x256xf32>
    %c0_46 = arith.constant 0 : index
    %c0_47 = arith.constant 0 : index
    %c0_48 = arith.constant 0 : index
    %114 = vector.load %arg10[%c0_46, %c0_47, %c0_48] : memref<1x7x256xf32, #tpu.memory_space<vmem>>, vector<1x7x256xf32>
    %115 = vector.shape_cast %114 : vector<1x7x256xf32> to vector<7x256xf32>
    %116 = vector.shape_cast %113 : vector<7x256xf32> to vector<1x7x256xf32>
    tpu.vector_store %arg10[%c0_46, %c0_47, %c0_48], %116 {strides = array<i32>} : memref<1x7x256xf32, #tpu.memory_space<vmem>>, vector<1x7x256xf32>,
    return
  }
  func.func @transform_0(%arg0: i32) -> (i32, i32, i32) {
    %c0_i32 = arith.constant 0 : i32
    %c0_i32_0 = arith.constant 0 : i32
    %c0_i32_1 = arith.constant 0 : i32
    return %arg0, %c0_i32, %c0_i32_0 : i32, i32, i32
  }
  func.func @transform_1(%arg0: i32) -> (i32, i32) {
    %c0_i32 = arith.constant 0 : i32
    %c0_i32_0 = arith.constant 0 : i32
    %c0_i32_1 = arith.constant 0 : i32
    return %c0_i32, %c0_i32_0 : i32, i32
  }
  func.func @transform_2(%arg0: i32) -> (i32, i32) {
    %c0_i32 = arith.constant 0 : i32
    %c0_i32_0 = arith.constant 0 : i32
    %c0_i32_1 = arith.constant 0 : i32
    return %c0_i32, %c0_i32_0 : i32, i32
  }
  func.func @transform_3(%arg0: i32) -> (i32, i32) {
    %c0_i32 = arith.constant 0 : i32
    %c0_i32_0 = arith.constant 0 : i32
    %c0_i32_1 = arith.constant 0 : i32
    return %c0_i32, %c0_i32_0 : i32, i32
  }
  func.func @transform_4(%arg0: i32) -> (i32, i32) {
    %c0_i32 = arith.constant 0 : i32
    %c0_i32_0 = arith.constant 0 : i32
    %c0_i32_1 = arith.constant 0 : i32
    return %c0_i32, %c0_i32_0 : i32, i32
  }
  func.func @transform_5(%arg0: i32) -> (i32, i32) {
    %c0_i32 = arith.constant 0 : i32
    %c0_i32_0 = arith.constant 0 : i32
    %c0_i32_1 = arith.constant 0 : i32
    return %c0_i32, %c0_i32_0 : i32, i32
  }
  func.func @transform_6(%arg0: i32) -> (i32, i32) {
    %c0_i32 = arith.constant 0 : i32
    %c0_i32_0 = arith.constant 0 : i32
    %c0_i32_1 = arith.constant 0 : i32
    return %c0_i32, %c0_i32_0 : i32, i32
  }
  func.func @transform_7(%arg0: i32) -> (i32, i32) {
    %c0_i32 = arith.constant 0 : i32
    %c0_i32_0 = arith.constant 0 : i32
    %c0_i32_1 = arith.constant 0 : i32
    return %c0_i32, %c0_i32_0 : i32, i32
  }
  func.func @transform_8(%arg0: i32) -> (i32, i32) {
    %c0_i32 = arith.constant 0 : i32
    %c0_i32_0 = arith.constant 0 : i32
    %c0_i32_1 = arith.constant 0 : i32
    return %c0_i32, %c0_i32_0 : i32, i32
  }
  func.func @transform_9(%arg0: i32) -> (i32, i32, i32) {
    %c0_i32 = arith.constant 0 : i32
    %c0_i32_0 = arith.constant 0 : i32
    %c0_i32_1 = arith.constant 0 : i32
    return %arg0, %c0_i32, %c0_i32_0 : i32, i32, i32
  }
}

</mosaic_0001>

<bundles_post_ra>
// kernel: tpu_custom_call.1
= control target key start
LH: loop header
LB: loop body
LE: loop exit
PB: predicated region body
PF: predicated region fallthrough
CT: control target
= control target key end

     0   :  { %14 = vsyncpa [#allocation6], 0  ;;  %s2012_s30 = smov 0   ;;  %s2306_s0 = inlined_call_operand.vmem [shape: f32[2,1,80], index: 0, kind: input, shape index: {}]   ;;  %s2307_s1 = inlined_call_operand.vmem [shape: f32[32,3], index: 1, kind: input, shape index: {}]   ;;  %s2308_s2 = inlined_call_operand.vmem [shape: f32[32,1], index: 2, kind: input, shape index: {}]   ;;  %s2309_s3 = inlined_call_operand.vmem [shape: bf16[96,64], index: 3, kind: input, shape index: {}]   ;;  %s2310_s4 = inlined_call_operand.vmem [shape: f32[1,64], index: 4, kind: input, shape index: {}]   ;;  %s2311_s5 = inlined_call_operand.vmem [shape: bf16[192,128], index: 5, kind: input, shape index: {}]   ;;  %s2312_s6 = inlined_call_operand.vmem [shape: f32[1,128], index: 6, kind: input, shape index: {}]   ;;  %s2313_s7 = inlined_call_operand.hbm [shape: bf16[384,256], index: 7, kind: input, shape index: {}]   ;;  %s2314_s8 = inlined_call_operand.vmem [shape: f32[1,256], index: 8, kind: input, shape index: {}]   ;;  %s2315_s9 = inlined_call_operand.vmem [shape: f32[2,7,256], index: 9, kind: output, shape index: {}]  }
   0x1 LB: > { %s2018_s10 = sadd.s32 4294967295, %s1944_s30   ;;  %p1618_p0 = scmp.ge.s32.totalorder %s1944_s30, 1  ;;  %s1944_s30 = sphi %s2012_s30, %s20_s30  }
   0x2   : > { %p245_p1 = scmp.lt.s32.totalorder %s1944_s30, 3  ;;  %s1946_s11 = smov [#allocation5]  }
   0x3   : > { %s275_s12 = sshll.u32 %s1946_s11, 4  ;;  %p2316_p3 = scmp.eq.s32.totalorder %s2018_s10, 0  ;;  %s276_s12 = int_to_ptr.vmem [resolvable:$true] %s275_s12 }
   0x4   : > { %p2022_p2 = pnand %p1618_p0, %p245_p1  ;;  %s1906_s17 = scalar_lea.hbm %s2313_s7, 6144 }
   0x5   : > { %p1907_p6 = scmp.ne.s32.totalorder %s2313_s7, %s1906_s17  ;;  %p1913_p10 = scmp.lt.u32.totalorder %s1906_s17, %s2313_s7 }
   0x6   : > { %s2318_s13 = scalar_select %p2022_p2, 1, 0 }
   0x7   : > { %p1750_p4 = pneg %p2022_p2 }
   0x9   : > { %p2031_p5 = pnand %p2316_p3, %p1750_p4 }
   0xb   : > { %p1908_p7 = pneg %p2031_p5 }
   0xd   : > { %p1909_p8 = pnand %p1908_p7, %p1907_p6 }
   0xf   : > { %p1910_p9 = pneg %p1909_p8 }
  0x11   : > { %p1915_p11 = pnand %p1913_p10, %p1910_p9 }
  0x13   : > { %1918 = shalt.err (!%p1915_p11)
}
  0x14   : > { %s1919_s22 = scalar_lea.vmem %s276_s12, 6144  ;;  %p1927_p1 = scmp.lt.s32.totalorder %s276_s12, %s276_s12 }
  0x15   : > { %p1920_p12 = scmp.ne.s32.totalorder %s276_s12, %s1919_s22  ;;  %p1928_p4 = scmp.lt.s32.totalorder %s1919_s22, %s1919_s22 }
  0x17   : > { %p1922_p13 = pnand %p1920_p12, %p1908_p7  ;;  %p1929_p3 = por %p1928_p4, %p1927_p1 }
  0x19   : > { %p1923_p0 = pneg %p1922_p13 }
  0x1b   : > { %p1930_p2 = pnand %p1929_p3, %p1923_p0 }
  0x1d   : > { %1933 = shalt.err (!%p1930_p2)
}
  0x1e   : > { %s1947_s23 = smov 128   ;;  %s1948_s24 = smov 8  }
  0x1f   : > { %1753 = dma.hbm_to_vmem [thread:$0]  (!%p2031_p5), %s2313_s7, 6144, %s276_s12, [#allocation6], %s1947_s23, %s1947_s23, %s1948_s24  }
  0x20   : > { %p2320_p6 = scmp.ne.s32.totalorder %s2318_s13, 0 }
  0x21   : > { %p2321_p8 = scmp.eq.s32.totalorder (!%p2320_p6), %s2018_s10, 0 }
  0x22   : > { %300 = sbr.rel (%p2320_p6) target bundleno = 1477 (0x5c5), region = 56 }
  0x29   : > { %1939 = dma.done.wait (%p2321_p8), [#allocation6], 6144   ;;  %p2322_p7 = pmov %p2321_p8 }
  0x2a   : > { %v1949_v0 = vmov 0   ;;  %p334_p2 = scmp.lt.s32.totalorder %s2018_s10, 1  ;;  %v360_v1 = vld [vmem:[%s2307_s1 + $0x8] sm:$0xff]  ;;  %v359_v2 = vld [vmem:[%s2307_s1] sm:$0xff]  ;;  %v1950_v3 = vmov 1   ;;  %v361_v5 = vld [vmem:[%s2307_s1 + $0x10] sm:$0xff]  ;;  %v383_v14 = vlaneseq }
  0x2b   : > { %1941 = vsyncadd (%p2322_p7), [#allocation6], 4294961152  ;;  %1782 = vset.pattern.permute.xlu1 %v1949_v0  ;;  %1780 = vset.pattern.permute.xlu0 %v1949_v0  ;;  %v1951_v6 = vmov 2   ;;  %s1952_s17 = smov 1   ;;  %v362_v7 = vld [vmem:[%s2307_s1 + $0x18] sm:$0xff]  ;;  %s1953_s20 = smov 127  }
  0x2c   : > { %1059 = vmatprep.subr.bf16.mxu1 %v1949_v0  ;;  %s2324_s10 = smov (!%p334_p2, %s2018_s10), 1  ;;  %370 = vperm.xlu1 %1782, %v360_v1   ;;  %v444_v8 = vld [vmem:[%s2308_s2] sm:$0xff]  ;;  %v446_v9 = vld [vmem:[%s2308_s2 + $0x10] sm:$0xff]  ;;  %v445_v10 = vld [vmem:[%s2308_s2 + $0x8] sm:$0xff]  ;;  %v2101_v17 = vshrl.u32 %v383_v14, 7  ;;  %vm352_vm0 = vcmask 7168  }
  0x2d   : > { %365 = vperm.xlu0 %1780, %v359_v2   ;;  %s336_s14 = scalar_lea.vmem %s2306_s0, %s2324_s10  ;;  %v447_v11 = vld [vmem:[%s2308_s2 + $0x18] sm:$0xff]  ;;  %vm357_vm1 = vcmask 646144   ;;  %s1954_s29 = smov 126   ;;  %vm572_vm2 = vcmask 261120   ;;  %vm613_vm5 = vcmask 1040384   ;;  %vm1959_vm6 = vmmov 0  }
  0x2e   : > { %v2074_v4 = vld [vmem:[%s336_s14] ss:$0 sm:$0xff]  ;;  %v2104_v20 = vsub.s32 0, %v2101_v17  ;;  %s1955_s11 = smov 125   ;;  %s1956_s12 = smov 124   ;;  %vm629_vm8 = vcmask 1046528  }
  0x2f   : > { %s1958_s25 = smov 32   ;;  %vm582_vm9 = vcmask 257024   ;;  %s1960_s26 = smov 64   ;;  %vm640_vm12 = vcmask 1044480   ;;  %vm678_vm13 = vcmask 523264   ;;  %vm742_vm14 = vcmask 785408  }
  0x30   : > { %1783 = vset.pattern.permute.xlu1 %v1950_v3  ;;  %s1708_s19 = sshll.u32 %s2324_s10, 4 }
  0x31   : > { %1781 = vset.pattern.permute.xlu0 %v1950_v3  ;;  %396 = vperm.xlu1 %1783, %v360_v1   ;;  %s341_s22 = scalar_lea.vmem %s2315_s9, %s1708_s19 }
  0x32   : > { %392 = vperm.xlu0 %1781, %v359_v2  }
  0x35   : > { %1784 = vset.pattern.permute.xlu1 %v1951_v6 }
  0x36   : > { %349 = vrot.lane.b32.xlu0 %v2074_v4, %s1952_s17  ;;  %417 = vperm.xlu1 %1784, %v359_v2  }
  0x3a   : > { %400 = vperm.xlu0 %1781, %v361_v5   ;;  %1785 = vset.pattern.permute.xlu1 %v1949_v0 }
  0x3b   : > { %375 = vperm.xlu1 %1785, %v361_v5  }
  0x3e   : > { %354 = vrot.lane.b32.xlu0 %v2074_v4, %s1953_s20 }
  0x3f   : > { %1786 = vset.pattern.permute.xlu1 %v1951_v6 }
  0x40   : > { %421 = vperm.xlu1 %1786, %v360_v1  }
  0x42   : > { %404 = vperm.xlu0 %1781, %v362_v7  }
  0x44   : > { %1787 = vset.pattern.permute.xlu1 %v1949_v0 }
  0x45   : > { %380 = vperm.xlu1 %1787, %v362_v7  }
  0x46   : > { %1789 = vset.pattern.permute.xlu0 %v1949_v0 }
  0x47   : > { %450 = vperm.xlu0 %1789, %v444_v8  }
  0x49   : > { %1788 = vset.pattern.permute.xlu1 %v1951_v6 }
  0x4a   : > { %425 = vperm.xlu1 %1788, %v361_v5  }
  0x4b   : > { %460 = vperm.xlu0 %1789, %v446_v9  }
  0x4e   : > { %429 = vperm.xlu1 %1788, %v362_v7  }
  0x52   : > { %1790 = vset.pattern.permute.xlu1 %v1949_v0 }
  0x53   : > { %455 = vperm.xlu1 %1790, %v445_v10  }
  0x57   : > { %465 = vperm.xlu1 %1790, %v447_v11  }
  0xab   : > { %v371_v12 = vpop.permute.xlu1 %370 }
  0xac   : > { %v366_v13 = vpop.permute.xlu0 %365 }
  0xb0   : > { %v397_v15 = vpop.permute.xlu1 %396 }
  0xb1   : > { %v393_v16 = vpop.permute.xlu0 %392  ;;  %v409_v40 = vmul.f32 %v2074_v4, %v397_v15 }
  0xb2   : > { %v408_v27 = vmul.f32 %v2074_v4, %v393_v16 }
  0xb5   : > { %v350_v18 = vpop.permute.xlu0 %349  ;;  %v418_v19 = vpop.permute.xlu1 %417 }
  0xb6   : > { %v353_v21 = vsel %vm352_vm0, 0.0, %v350_v18 }
  0xb7   : > { %v386_v23 = vrot.slane %v353_v21, %v2104_v20 }
  0xb9   : > { %v401_v22 = vpop.permute.xlu0 %400  ;;  %v387_v29 = vmul.f32 %v386_v23, %v366_v13  ;;  %v388_v39 = vmul.f32 %v386_v23, %v371_v12 }
  0xba   : > { %v376_v24 = vpop.permute.xlu1 %375  ;;  %v410_v41 = vmul.f32 %v2074_v4, %v401_v22 }
  0xbb   : > { %v412_v33 = vadd.f32 %v408_v27, %v387_v29  ;;  %v389_v42 = vmul.f32 %v386_v23, %v376_v24  ;;  %v413_v47 = vadd.f32 %v409_v40, %v388_v39  ;;  %v1818_v39 = vld [vmem:[%s2309_s3 + $0x10] sm:$0xff]  }
  0xbd   : > { %v355_v25 = vpop.permute.xlu0 %354  ;;  %v414_v48 = vadd.f32 %v410_v41, %v389_v42  ;;  %v1819_v41 = vld [vmem:[%s2309_s3 + $0x18] sm:$0xff]  }
  0xbe   : > { %v358_v26 = vsel %vm357_vm1, %v355_v25, 0.0  ;;  %vm847_vm1 = vcmask 1045504  }
  0xbf   : > { %v435_v28 = vrot.slane %v358_v26, %v2104_v20  ;;  %v422_v30 = vpop.permute.xlu1 %421 }
  0xc1   : > { %v405_v31 = vpop.permute.xlu0 %404  ;;  %v436_v32 = vmul.f32 %v435_v28, %v418_v19  ;;  %v437_v43 = vmul.f32 %v435_v28, %v422_v30 }
  0xc2   : > { %v411_v49 = vmul.f32 %v2074_v4, %v405_v31 }
  0xc3   : > { %v440_v35 = vadd.f32 %v436_v32, %v412_v33  ;;  %v441_v51 = vadd.f32 %v437_v43, %v413_v47  ;;  %v1816_v32 = vld [vmem:[%s2309_s3] sm:$0xff]   ;;  %v1957_v33 = vmov 0.0  }
  0xc4   : > { %v381_v34 = vpop.permute.xlu1 %380  ;;  %1718 = vmatprep.subr.bf16.mxu0 %v1957_v33  ;;  %1730 = vmatprep.mubr.msk.bf16.mxu0 %vm1959_vm6, %v1957_v33 }
  0xc5   : > { %v390_v45 = vmul.f32 %v386_v23, %v381_v34  ;;  %1719 = vmatpush3.bf16.msra.mxu0 %v1816_v32  ;;  %v1817_v34 = vld [vmem:[%s2309_s3 + $0x8] sm:$0xff]  }
  0xc6   : > { %v451_v36 = vpop.permute.xlu0 %450  ;;  %1720 = vmatprep.subr.bf16.mxu0 %v1957_v33 }
  0xc7   : > { %v468_v37 = vadd.f32 %v451_v36, %v440_v35  ;;  %v415_v53 = vadd.f32 %v411_v49, %v390_v45 }
  0xc9   : > { %476 = vrot.lane.b32.xlu0 %v468_v37, %s1953_s20  ;;  %v426_v38 = vpop.permute.xlu1 %425  ;;  %1721 = vmatpush3.bf16.msra.mxu0 %v1817_v34 }
  0xca   : > { %v438_v46 = vmul.f32 %v435_v28, %v426_v38  ;;  %v461_v56 = vpop.permute.xlu0 %460  ;;  %1722 = vmatprep.subr.bf16.mxu0 %v1957_v33 }
  0xcc   : > { %v442_v54 = vadd.f32 %v438_v46, %v414_v48 }
  0xcd   : > { %492 = vrot.lane.b32.xlu0 %v468_v37, %s1954_s29  ;;  %v430_v44 = vpop.permute.xlu1 %429  ;;  %1723 = vmatpush3.bf16.msra.mxu0 %v1818_v39 }
  0xce   : > { %v439_v50 = vmul.f32 %v435_v28, %v430_v44  ;;  %v470_v59 = vadd.f32 %v461_v56, %v442_v54  ;;  %1724 = vmatprep.subr.bf16.mxu0 %v1957_v33  ;;  %v1820_v44 = vld [vmem:[%s2309_s3 + $0x20] sm:$0xff]   ;;  %v1821_v54 = vld [vmem:[%s2309_s3 + $0x28] sm:$0xff]  }
  0xd0   : > { %v443_v57 = vadd.f32 %v439_v50, %v415_v53 }
  0xd1   : > { %1725 = vmatpush3.bf16.msra.mxu0 %v1819_v41 }
  0xd2   : > { %v456_v52 = vpop.permute.xlu1 %455  ;;  %1726 = vmatprep.subr.bf16.mxu0 %v1957_v33 }
  0xd3   : > { %v469_v55 = vadd.f32 %v456_v52, %v441_v51 }
  0xd5   : > { %478 = vrot.lane.b32.xlu1 %v469_v55, %s1953_s20  ;;  %494 = vrot.lane.b32.xlu0 %v469_v55, %s1954_s29 }
  0xd6   : > { %v466_v58 = vpop.permute.xlu1 %465  ;;  %1727 = vmatpush3.bf16.msra.mxu0 %v1820_v44 }
  0xd7   : > { %v471_v60 = vadd.f32 %v466_v58, %v443_v57  ;;  %1728 = vmatprep.subr.bf16.mxu0 %v1957_v33 }
  0xd9   : > { %480 = vrot.lane.b32.xlu1 %v470_v59, %s1953_s20  ;;  %482 = vrot.lane.b32.xlu0 %v471_v60, %s1953_s20 }
  0xda   : > { %1729 = vmatpush3.bf16.msra.mxu0 %v1821_v54 }
  0xdd   : > { %508 = vrot.lane.b32.xlu1 %v468_v37, %s1955_s11  ;;  %510 = vrot.lane.b32.xlu0 %v469_v55, %s1955_s11 }
  0xe1   : > { %496 = vrot.lane.b32.xlu1 %v470_v59, %s1954_s29  ;;  %498 = vrot.lane.b32.xlu0 %v471_v60, %s1954_s29 }
  0xe5   : > { %524 = vrot.lane.b32.xlu1 %v468_v37, %s1956_s12  ;;  %526 = vrot.lane.b32.xlu0 %v469_v55, %s1956_s12 }
  0xe9   : > { %512 = vrot.lane.b32.xlu1 %v470_v59, %s1955_s11  ;;  %528 = vrot.lane.b32.xlu0 %v470_v59, %s1956_s12 }
  0xed   : > { %514 = vrot.lane.b32.xlu1 %v471_v60, %s1955_s11 }
  0xf1   : > { %530 = vrot.lane.b32.xlu1 %v471_v60, %s1956_s12 }
 0x13b   : > { %v477_v61 = vpop.permute.xlu0 %476 }
 0x13c   : > { %v488_v6 = vmax.f32 %v468_v37, %v477_v61 }
 0x13f   : > { %v493_v62 = vpop.permute.xlu0 %492 }
 0x140   : > { %v504_v9 = vmax.f32 %v488_v6, %v493_v62 }
 0x147   : > { %v479_v63 = vpop.permute.xlu1 %478  ;;  %v495_v1 = vpop.permute.xlu0 %494 }
 0x148   : > { %v489_v10 = vmax.f32 %v469_v55, %v479_v63 }
 0x14a   : > { %v505_v13 = vmax.f32 %v489_v10, %v495_v1 }
 0x14b   : > { %v481_v2 = vpop.permute.xlu1 %480  ;;  %v483_v3 = vpop.permute.xlu0 %482 }
 0x14c   : > { %v490_v14 = vmax.f32 %v470_v59, %v481_v2  ;;  %v491_v24 = vmax.f32 %v471_v60, %v483_v3 }
 0x14f   : > { %v509_v4 = vpop.permute.xlu1 %508  ;;  %v511_v5 = vpop.permute.xlu0 %510 }
 0x150   : > { %v520_v11 = vmax.f32 %v504_v9, %v509_v4  ;;  %v521_v18 = vmax.f32 %v505_v13, %v511_v5 }
 0x153   : > { %v497_v7 = vpop.permute.xlu1 %496  ;;  %v499_v8 = vpop.permute.xlu0 %498 }
 0x154   : > { %v506_v19 = vmax.f32 %v490_v14, %v497_v7  ;;  %v507_v27 = vmax.f32 %v491_v24, %v499_v8 }
 0x157   : > { %v525_v12 = vpop.permute.xlu1 %524  ;;  %v527_v16 = vpop.permute.xlu0 %526 }
 0x158   : > { %v536_v15 = vmax.f32 %v520_v11, %v525_v12  ;;  %v537_v22 = vmax.f32 %v521_v18, %v527_v16 }
 0x15a   : > { %540 = vxpose.xlu0.b32.start [1/4] (short) (narrow) %v536_v15, 80 }
 0x15b   : > { %v513_v21 = vpop.permute.xlu1 %512  ;;  %v529_v25 = vpop.permute.xlu0 %528 }
 0x15c   : > { %v522_v23 = vmax.f32 %v506_v19, %v513_v21 }
 0x15e   : > { %541 = vxpose.xlu0.b32.cont [2/4] (short) (narrow) %v537_v22, 80  ;;  %v538_v28 = vmax.f32 %v522_v23, %v529_v25 }
 0x15f   : > { %v515_v26 = vpop.permute.xlu1 %514 }
 0x160   : > { %v523_v29 = vmax.f32 %v507_v27, %v515_v26 }
 0x162   : > { %542 = vxpose.xlu0.b32.cont [3/4] (short) (narrow) %v538_v28, 80 }
 0x163   : > { %v531_v30 = vpop.permute.xlu1 %530 }
 0x164   : > { %v539_v31 = vmax.f32 %v523_v29, %v531_v30 }
 0x166   : > { %543 = vxpose.xlu0.b32.end [4/4] (short) (narrow) %v539_v31, 80 }
 0x1da   : > { %v556_v35 = vpop.trf.xlu0 }
 0x1db   : > { %573 = vst.msk [vmem:[#allocation2] sm:$0xff] %vm572_vm2, %v556_v35 }
 0x1de   : > { %v557_v36 = vpop.trf.xlu0 }
 0x1df   : > { %574 = vst.msk [vmem:[#allocation2 + $0x8] sm:$0xff] %vm572_vm2, %v557_v36 }
 0x1e2   : > { %v558_v37 = vpop.trf.xlu0 }
 0x1e3   : > { %575 = vst.msk [vmem:[#allocation2 + $0x10] sm:$0xff] %vm572_vm2, %v558_v37 }
 0x1e6   : > { %v559_v38 = vpop.trf.xlu0  ;;  %v584_v40 = vld [vmem:[#allocation2] ss:$2 sm:$0xff] }
 0x1e7   : > { %576 = vst.msk [vmem:[#allocation2 + $0x18] sm:$0xff] %vm572_vm2, %v559_v38  ;;  %v598_v43 = vmul.f32 0.1, %v584_v40  ;;  %vm593_vm3 = vcmp.ge.f32.partialorder %v584_v40, 0.0 }
 0x1e9   : > { %v2146_v48 = vsel %vm593_vm3, %v584_v40, %v598_v43 }
 0x1ea   : > { %v560_v42 = vpop.trf.xlu0  ;;  %v614_v51 = vrot.slane %v2146_v48, 7  ;;  %v630_v61 = vrot.slane %v2146_v48, 1 }
 0x1eb   : > { %577 = vst.msk [vmem:[#allocation2 + $0x20] sm:$0xff] %vm572_vm2, %v560_v42 }
 0x1ec   : > { %v628_v30 = vsel %vm613_vm5, 0.0, %v614_v51 }
 0x1ee   : > { %v561_v45 = vpop.trf.xlu0  ;;  %v586_v46 = vld [vmem:[#allocation2 + $0x10] ss:$2 sm:$0xff] }
 0x1ef   : > { %578 = vst.msk [vmem:[#allocation2 + $0x28] sm:$0xff] %vm572_vm2, %v561_v45  ;;  %vm594_vm4 = vcmp.ge.f32.partialorder %v586_v46, 0.0  ;;  %v599_v47 = vmul.f32 0.1, %v586_v46 }
 0x1f1   : > { %v604_v49 = vsel %vm594_vm4, %v586_v46, %v599_v47 }
 0x1f2   : > { %v562_v50 = vpop.trf.xlu0  ;;  %v1791_v52 = vpack.i.bf16 %v604_v49, %v2146_v48  ;;  %v615_v53 = vrot.slane %v604_v49, 7  ;;  %v631_v59 = vrot.slane %v604_v49, 1 }
 0x1f3   : > { %579 = vst.msk [vmem:[#allocation2 + $0x30] sm:$0xff] %vm572_vm2, %v562_v50 }
 0x1f4   : > { %1792 = vrot.lane.b32.xlu1 %v1791_v52, %s1958_s25  ;;  %v616_v55 = vsel %vm613_vm5, %v614_v51, %v615_v53  ;;  %v632_v2 = vsel %vm629_vm8, %v630_v61, %v631_v59  ;;  %v1829_v61 = vld [vmem:[%s2311_s5 + $0x38] sm:$0xff]  }
 0x1f6   : > { %v563_v56 = vpop.trf.xlu0  ;;  %v588_v57 = vld [vmem:[#allocation2 + $0x20] ss:$2 sm:$0xff] }
 0x1f7   : > { %580 = vst.msk [vmem:[#allocation2 + $0x38] sm:$0xff] %vm572_vm2, %v563_v56  ;;  %vm595_vm7 = vcmp.ge.f32.partialorder %v588_v57, 0.0  ;;  %v600_v58 = vmul.f32 0.1, %v588_v57  ;;  %v1823_v56 = vld [vmem:[%s2311_s5 + $0x8] sm:$0xff]  }
 0x1f9   : > { %v605_v60 = vsel %vm595_vm7, %v588_v57, %v600_v58  ;;  %v1825_v57 = vld [vmem:[%s2311_s5 + $0x18] sm:$0xff]   ;;  %v1826_v58 = vld [vmem:[%s2311_s5 + $0x20] sm:$0xff]   ;;  %vm910_vm7 = vcmask 517120  }
 0x1fa   : > { %v564_v62 = vpop.trf.xlu0  ;;  %v633_v63 = vrot.slane %v605_v60, 1  ;;  %v617_v1 = vrot.slane %v605_v60, 7 }
 0x1fb   : > { %581 = vst.msk [vmem:[#allocation2 + $0x40] sm:$0xff] %vm572_vm2, %v564_v62  ;;  %v1830_v62 = vld [vmem:[%s2311_s5 + $0x40] sm:$0xff]  }
 0x1fc   : > { %v634_v3 = vsel %vm629_vm8, %v631_v59, %v633_v63  ;;  %v618_v4 = vsel %vm613_vm5, %v615_v53, %v617_v1  ;;  %v1827_v59 = vld [vmem:[%s2311_s5 + $0x28] sm:$0xff]  }
 0x1fd   : > { %v1796_v5 = vpack.i.bf16 %v634_v3, %v632_v2  ;;  %v1626_v2 = vld [vmem:[%s2310_s4] ss:$0 sm:$0xff] }
 0x1fe   : > { %v565_v6 = vpop.trf.xlu0  ;;  %v590_v7 = vld [vmem:[#allocation2 + $0x30] ss:$2 sm:$0xff] }
 0x1ff   : > { %583 = vst.msk [vmem:[#allocation2 + $0x48] sm:$0xf] %vm582_vm9, %v565_v6  ;;  %1797 = vrot.lane.b32.xlu1 %v1796_v5, %s1960_s26  ;;  %vm596_vm10 = vcmp.ge.f32.partialorder %v590_v7, 0.0  ;;  %v601_v8 = vmul.f32 0.1, %v590_v7 }
 0x201   : > { %v606_v9 = vsel %vm596_vm10, %v590_v7, %v601_v8 }
 0x202   : > { %v1801_v10 = vpack.i.bf16 %v606_v9, %v605_v60  ;;  %v619_v11 = vrot.slane %v606_v9, 7  ;;  %v635_v15 = vrot.slane %v606_v9, 1  ;;  %v1828_v60 = vld [vmem:[%s2311_s5 + $0x30] sm:$0xff]  }
 0x204   : > { %1802 = vrot.lane.b32.xlu1 %v1801_v10, %s1958_s25  ;;  %v620_v12 = vsel %vm613_vm5, %v617_v1, %v619_v11  ;;  %v636_v21 = vsel %vm629_vm8, %v633_v63, %v635_v15  ;;  %v1831_v63 = vld [vmem:[%s2311_s5 + $0x48] sm:$0xff]   ;;  %v1832_v1 = vld [vmem:[%s2311_s5 + $0x50] sm:$0xff]  }
 0x206   : > { %v592_v13 = vld [vmem:[#allocation2 + $0x40] ss:$2 sm:$0x3f] }
 0x207   : > { %vm597_vm11 = vcmp.ge.f32.partialorder %v592_v13, 0.0  ;;  %v602_v14 = vmul.f32 0.1, %v592_v13 }
 0x209   : > { %v607_v16 = vsel %vm597_vm11, %v592_v13, %v602_v14 }
 0x20a   : > { %v637_v18 = vrot.slane %v607_v16, 1  ;;  %v621_v19 = vrot.slane %v607_v16, 7 }
 0x20c   : > { %v638_v22 = vsel %vm629_vm8, %v635_v15, %v637_v18  ;;  %v622_v23 = vsel %vm613_vm5, %v619_v11, %v621_v19  ;;  %v641_v25 = vsel %vm640_vm12, %v637_v18, 0.0 }
 0x20d   : > { %v1806_v24 = vpack.i.bf16 %v638_v22, %v636_v21 }
 0x20f   : > { %1807 = vrot.lane.b32.xlu1 %v1806_v24, %s1960_s26 }
 0x213   : > { %650 = vrot.lane.b32.xlu1 %v607_v16, %s1958_s25 }
 0x217   : > { %666 = vrot.lane.b32.xlu1 %v641_v25, %s1960_s26 }
 0x266   : > { %v1793_v26 = vpop.permute.xlu1 %1792 }
 0x267   : > { %v1795_v27 = vunpack.i.h.bf16 %v1793_v26  ;;  %v1794_v28 = vunpack.i.l.bf16 %v1793_v26 }
 0x269   : > { %v673_v34 = vsel %vm572_vm2, %v628_v30, %v1794_v28  ;;  %v674_v35 = vsel %vm572_vm2, %v616_v55, %v1795_v27  ;;  %v1822_v55 = vld [vmem:[%s2311_s5] sm:$0xff]  }
 0x26a   : > { %1060 = vmatpush1.bf16.msra.mxu1 %v1822_v55 }
 0x26b   : > { %1061 = vmatprep.subr.bf16.mxu1 %v1949_v0 }
 0x26e   : > { %1062 = vmatpush1.bf16.msra.mxu1 %v1823_v56 }
 0x26f   : > { %1063 = vmatprep.subr.bf16.mxu1 %v1949_v0 }
 0x271   : > { %v1798_v29 = vpop.permute.xlu1 %1797 }
 0x272   : > { %v1800_v31 = vunpack.i.h.bf16 %v1798_v29  ;;  %v1799_v32 = vunpack.i.l.bf16 %v1798_v29 }
 0x274   : > { %v680_v36 = vsel %vm678_vm13, %v674_v35, %v1800_v31  ;;  %v679_v37 = vsel %vm678_vm13, %v673_v34, %v1799_v32 }
 0x275   : > { %v684_v38 = vpack.c.bf16 %v680_v36, %v679_v37 }
 0x276   : > { %v1803_v39 = vpop.permute.xlu1 %1802 }
 0x277   : > { %1731 = vmatmul.mubr.msk.bf16.vlgmr.msra.gmra.mrb[0].mxu0 %vm742_vm14, %v684_v38  ;;  %v1805_v40 = vunpack.i.h.bf16 %v1803_v39  ;;  %v1804_v41 = vunpack.i.l.bf16 %v1803_v39 }
 0x278   : > { %1734 = vmatprep.mubr.msk.bf16.mxu0 %vm1959_vm6, %v1957_v33 }
 0x279   : > { %v675_v45 = vsel %vm572_vm2, %v618_v4, %v1804_v41  ;;  %v676_v46 = vsel %vm572_vm2, %v620_v12, %v1805_v40 }
 0x281   : > { %v1808_v42 = vpop.permute.xlu1 %1807 }
 0x282   : > { %v1810_v43 = vunpack.i.h.bf16 %v1808_v42  ;;  %v1809_v44 = vunpack.i.l.bf16 %v1808_v42 }
 0x284   : > { %v682_v47 = vsel %vm678_vm13, %v676_v46, %v1810_v43  ;;  %v681_v48 = vsel %vm678_vm13, %v675_v45, %v1809_v44 }
 0x285   : > { %v685_v49 = vpack.c.bf16 %v682_v47, %v681_v48  ;;  %v651_v50 = vpop.permute.xlu1 %650 }
 0x286   : > { %v677_v51 = vsel %vm572_vm2, %v622_v23, %v651_v50  ;;  %vm886_vm2 = vcmask 1043456  }
 0x287   : > { %1735 = vmatmul.mubr.msk.bf16.gmra.mrb[4].mxu0 %vm742_vm14, %v685_v49 }
 0x288   : > { %1738 = vmatprep.mubr.msk.bf16.mxu0 %vm1959_vm6, %v1957_v33  ;;  %v1824_v33 = vld [vmem:[%s2311_s5 + $0x10] sm:$0xff]  }
 0x289   : > { %v667_v52 = vpop.permute.xlu1 %666  ;;  %1064 = vmatpush1.bf16.msra.mxu1 %v1824_v33 }
 0x28a   : > { %v683_v53 = vsel %vm678_vm13, %v677_v51, %v667_v52  ;;  %1065 = vmatprep.subr.bf16.mxu1 %v1949_v0 }
 0x28b   : > { %v686_v54 = vpack.c.bf16 %v683_v53, %v683_v53 }
 0x28d   : > { %1066 = vmatpush1.bf16.msra.mxu1 %v1825_v57 }
 0x28e   : > { %1067 = vmatprep.subr.bf16.mxu1 %v1949_v0 }
 0x28f   : > { %1739 = vmatmul.mubr.msk.bf16.gmra.mrb[8].mxu0 %vm742_vm14, %v686_v54 }
 0x291   : > { %1068 = vmatpush1.bf16.msra.mxu1 %v1826_v58 }
 0x292   : > { %1069 = vmatprep.subr.bf16.mxu1 %v1949_v0 }
 0x295   : > { %1070 = vmatpush1.bf16.msra.mxu1 %v1827_v59 }
 0x296   : > { %1071 = vmatprep.subr.bf16.mxu1 %v1949_v0 }
 0x299   : > { %1072 = vmatpush1.bf16.msra.mxu1 %v1828_v60 }
 0x29a   : > { %1073 = vmatprep.subr.bf16.mxu1 %v1949_v0 }
 0x29d   : > { %1074 = vmatpush1.bf16.msra.mxu1 %v1829_v61 }
 0x29e   : > { %1075 = vmatprep.subr.bf16.mxu1 %v1949_v0 }
 0x2a1   : > { %1076 = vmatpush1.bf16.msra.mxu1 %v1830_v62 }
 0x2a2   : > { %1077 = vmatprep.subr.bf16.mxu1 %v1949_v0 }
 0x2a5   : > { %1078 = vmatpush1.bf16.msra.mxu1 %v1831_v63 }
 0x2a6   : > { %1079 = vmatprep.subr.bf16.mxu1 %v1949_v0 }
 0x2a9   : > { %1080 = vmatpush1.bf16.msra.mxu1 %v1832_v1 }
 0x2aa   : > { %1081 = vmatprep.subr.bf16.mxu1 %v1949_v0 }
 0x34a   : > { %v786_v3 = vpop.f32.mrb[0].mxu0 }
 0x34b   : > { %v787_v4 = vadd.f32 %v1626_v2, %v786_v3  ;;  %v1732_v5 = vpop.f32.mrb[1].mxu0 }
 0x34c   : > { %v789_v6 = vpop.f32.mrb[2].mxu0 }
 0x34d   : > { %vm808_vm15 = vcmp.ge.f32.partialorder %v787_v4, 0.0  ;;  %v813_v7 = vmul.f32 0.1, %v787_v4  ;;  %v790_v8 = vadd.f32 %v1626_v2, %v789_v6  ;;  %v1733_v9 = vpop.f32.mrb[3].mxu0 }
 0x34f   : > { %v818_v10 = vsel %vm808_vm15, %v787_v4, %v813_v7  ;;  %vm809_vm0 = vcmp.ge.f32.partialorder %v790_v8, 0.0  ;;  %v814_v11 = vmul.f32 0.1, %v790_v8 }
 0x350   : > { %v828_v12 = vrot.slane %v818_v10, 1  ;;  %v848_v13 = vrot.slane %v818_v10, 2  ;;  %v867_v14 = vrot.slane %v818_v10, 3  ;;  %v887_v15 = vrot.slane %v818_v10, 4 }
 0x351   : > { %v819_v16 = vsel %vm809_vm0, %v790_v8, %v814_v11 }
 0x352   : > { %v829_v18 = vrot.slane %v819_v16, 1  ;;  %v849_v19 = vrot.slane %v819_v16, 2  ;;  %v868_v21 = vrot.slane %v819_v16, 3  ;;  %v888_v22 = vrot.slane %v819_v16, 4 }
 0x354   : > { %v830_v23 = vsel %vm629_vm8, %v828_v12, %v829_v18  ;;  %v850_v24 = vsel %vm847_vm1, %v848_v13, %v849_v19  ;;  %v869_v25 = vsel %vm640_vm12, %v867_v14, %v868_v21  ;;  %v889_v26 = vsel %vm886_vm2, %v887_v15, %v888_v22 }
 0x355   : > { %v842_v27 = vmax.f32 %v818_v10, %v830_v23 }
 0x357   : > { %v862_v28 = vmax.f32 %v842_v27, %v850_v24 }
 0x359   : > { %v881_v29 = vmax.f32 %v862_v28, %v869_v25 }
 0x35a   : > { %v794_v30 = vpop.f32.mrb[4].mxu0 }
 0x35b   : > { %v901_v31 = vmax.f32 %v881_v29, %v889_v26  ;;  %v795_v32 = vadd.f32 %v1626_v2, %v794_v30  ;;  %v1736_v34 = vpop.f32.mrb[5].mxu0  ;;  %v1833_v26 = vld [vmem:[%s2311_s5 + $0x58] sm:$0xff]  }
 0x35c   : > { %v797_v35 = vpop.f32.mrb[6].mxu0  ;;  %1082 = vmatpush1.bf16.msra.mxu1 %v1833_v26  ;;  %v1890_v26 = vld [vmem:[#allocation5 + $0xd4] ss:$8 sps:$4 sm:$0xff]  }
 0x35d   : > { %906 = vst.msk [vmem:[#allocation3] sm:$0xff] %vm678_vm13, %v901_v31  ;;  %vm810_vm3 = vcmp.ge.f32.partialorder %v795_v32, 0.0  ;;  %v815_v36 = vmul.f32 0.1, %v795_v32  ;;  %v798_v37 = vadd.f32 %v1626_v2, %v797_v35  ;;  %v1737_v38 = vpop.f32.mrb[7].mxu0 }
 0x35f   : > { %v820_v39 = vsel %vm810_vm3, %v795_v32, %v815_v36  ;;  %vm811_vm4 = vcmp.ge.f32.partialorder %v798_v37, 0.0  ;;  %v816_v40 = vmul.f32 0.1, %v798_v37 }
 0x360   : > { %v831_v41 = vrot.slane %v820_v39, 1  ;;  %v851_v42 = vrot.slane %v820_v39, 2  ;;  %v870_v43 = vrot.slane %v820_v39, 3  ;;  %v890_v44 = vrot.slane %v820_v39, 4 }
 0x361   : > { %v821_v45 = vsel %vm811_vm4, %v798_v37, %v816_v40 }
 0x362   : > { %v832_v46 = vsel %vm629_vm8, %v829_v18, %v831_v41  ;;  %v852_v47 = vsel %vm847_vm1, %v849_v19, %v851_v42  ;;  %v871_v48 = vsel %vm640_vm12, %v868_v21, %v870_v43  ;;  %v891_v49 = vsel %vm886_vm2, %v888_v22, %v890_v44  ;;  %v802_v50 = vpop.f32.mrb[8].mxu0 }
 0x363   : > { %v843_v51 = vmax.f32 %v819_v16, %v832_v46  ;;  %v833_v52 = vrot.slane %v821_v45, 1  ;;  %v853_v53 = vrot.slane %v821_v45, 2  ;;  %v872_v54 = vrot.slane %v821_v45, 3  ;;  %v1740_v55 = vpop.f32.mrb[9].mxu0  ;;  %v1842_v46 = vld [vmem:[#allocation5 + $0x24] ss:$8 sps:$4 sm:$0xff]  }
 0x364   : > { %v892_v56 = vrot.slane %v821_v45, 4  ;;  %v803_v33 = vadd.f32 %v1626_v2, %v802_v50  ;;  %v805_v57 = vpop.f32.mrb[10].mxu0  ;;  %v1843_v50 = vld [vmem:[#allocation5 + $0x30] ss:$8 sps:$4 sm:$0xff]   ;;  %v1854_v55 = vld [vmem:[#allocation5 + $0x64] ss:$8 sps:$4 sm:$0xff]  }
 0x365   : > { %v863_v58 = vmax.f32 %v843_v51, %v852_v47  ;;  %v834_v59 = vsel %vm629_vm8, %v831_v41, %v833_v52  ;;  %v854_v60 = vsel %vm847_vm1, %v851_v42, %v853_v53  ;;  %v873_v61 = vsel %vm640_vm12, %v870_v43, %v872_v54  ;;  %v1741_v62 = vpop.f32.mrb[11].mxu0  ;;  %v1834_v41 = vld [vmem:[#allocation5] ss:$8 sps:$4 sm:$0xff]   ;;  %v1836_v42 = vld [vmem:[#allocation5 + $0x4] ss:$8 sps:$4 sm:$0xff]  }
 0x366   : > { %v844_v63 = vmax.f32 %v820_v39, %v834_v59  ;;  %v893_v1 = vsel %vm886_vm2, %v890_v44, %v892_v56  ;;  %vm812_vm6 = vcmp.ge.f32.partialorder %v803_v33, 0.0  ;;  %v817_v3 = vmul.f32 0.1, %v803_v33  ;;  %v1839_v44 = vld [vmem:[#allocation5 + $0x14] ss:$8 sps:$4 sm:$0xff]   ;;  %1462 = vmatprep.subr.bf16.mxu0 %v1836_v42 }
 0x367   : > { %v882_v4 = vmax.f32 %v863_v58, %v871_v48  ;;  %1463 = vmatpush1.bf16.msra.mxu0 %v1834_v41  ;;  %v1863_v47 = vld [vmem:[#allocation5 + $0x104] ss:$8 sps:$4 sm:$0xff]   ;;  %v1840_v48 = vld [vmem:[#allocation5 + $0x20] ss:$8 sps:$4 sm:$0xff]   ;;  %v1855_v57 = vld [vmem:[#allocation5 + $0x70] ss:$8 sps:$4 sm:$0xff]  }
 0x368   : > { %v864_v5 = vmax.f32 %v844_v63, %v854_v60  ;;  %v822_v6 = vsel %vm812_vm6, %v803_v33, %v817_v3  ;;  %1464 = vmatprep.subr.bf16.mxu0 %v1839_v44  ;;  %1503 = vmatprep.subr.bf16.mxu1 %v1863_v47  ;;  %v1848_v51 = vld [vmem:[#allocation5 + $0x44] ss:$8 sps:$4 sm:$0xff]   ;;  %v1857_v33 = vld [vmem:[#allocation5 + $0x74] ss:$8 sps:$4 sm:$0xff]   ;;  %v1858_v59 = vld [vmem:[#allocation5 + $0x80] ss:$8 sps:$4 sm:$0xff]  }
 0x369   : > { %v902_v7 = vmax.f32 %v882_v4, %v891_v49  ;;  %v835_v8 = vrot.slane %v822_v6, 1  ;;  %v855_v2 = vrot.slane %v822_v6, 2  ;;  %v874_v9 = vrot.slane %v822_v6, 3  ;;  %v1845_v49 = vld [vmem:[#allocation5 + $0x34] ss:$8 sps:$4 sm:$0xff]  }
 0x36a   : > { %v883_v10 = vmax.f32 %v864_v5, %v873_v61  ;;  %v894_v11 = vrot.slane %v822_v6, 4  ;;  %v1860_v58 = vld [vmem:[#allocation5 + $0x84] ss:$8 sps:$4 sm:$0xff]   ;;  %v1861_v4 = vld [vmem:[#allocation5 + $0x100] ss:$8 sps:$4 sm:$0xff]  }
 0x36b   : > { %907 = vst.msk [vmem:[#allocation3 + $0x8] sm:$0xff] %vm678_vm13, %v902_v7  ;;  %v836_v12 = vsel %vm629_vm8, %v833_v52, %v835_v8  ;;  %v846_v13 = vmax.f32 %v822_v6, %v835_v8  ;;  %v856_v14 = vsel %vm847_vm1, %v853_v53, %v855_v2  ;;  %v875_v15 = vsel %vm640_vm12, %v872_v54, %v874_v9  ;;  %v1846_v52 = vld [vmem:[#allocation5 + $0x40] ss:$8 sps:$4 sm:$0xff]   ;;  %v1851_v53 = vld [vmem:[#allocation5 + $0x54] ss:$8 sps:$4 sm:$0xff]  }
 0x36c   : > { %v903_v16 = vmax.f32 %v883_v10, %v893_v1  ;;  %v845_v18 = vmax.f32 %v821_v45, %v836_v12  ;;  %v895_v19 = vsel %vm886_vm2, %v892_v56, %v894_v11  ;;  %v1837_v45 = vld [vmem:[#allocation5 + $0x10] ss:$8 sps:$4 sm:$0xff]   ;;  %v1852_v56 = vld [vmem:[#allocation5 + $0x60] ss:$8 sps:$4 sm:$0xff]   ;;  %v1961_v7 = vmov 0.0|0.0  }
 0x36d   : > { %v866_v21 = vmax.f32 %v846_v13, %v855_v2  ;;  %1465 = vmatpush1.bf16.msra.mxu0 %v1837_v45  ;;  %v1849_v54 = vld [vmem:[#allocation5 + $0x50] ss:$8 sps:$4 sm:$0xff]   ;;  %v1869_v10 = vld [vmem:[#allocation5 + $0x114] ss:$8 sps:$4 sm:$0xff]   ;;  %v1872_v13 = vld [vmem:[#allocation5 + $0xa4] ss:$8 sps:$4 sm:$0xff]  }
 0x36e   : > { %908 = vst.msk [vmem:[#allocation3 + $0x10] sm:$0xff] %vm678_vm13, %v903_v16  ;;  %v865_v22 = vmax.f32 %v845_v18, %v856_v14  ;;  %1466 = vmatprep.subr.bf16.mxu0 %v1842_v46  ;;  %v1867_v12 = vld [vmem:[#allocation5 + $0x110] ss:$8 sps:$4 sm:$0xff]   ;;  %v1875_v14 = vld [vmem:[#allocation5 + $0x124] ss:$8 sps:$4 sm:$0xff]  }
 0x36f   : > { %v885_v23 = vmax.f32 %v866_v21, %v874_v9  ;;  %v1866_v9 = vld [vmem:[#allocation5 + $0x94] ss:$8 sps:$4 sm:$0xff]   ;;  %v1873_v16 = vld [vmem:[#allocation5 + $0x120] ss:$8 sps:$4 sm:$0xff]   ;;  %v1876_v21 = vld [vmem:[#allocation5 + $0xb0] ss:$8 sps:$4 sm:$0xff]  }
 0x370   : > { %v884_v24 = vmax.f32 %v865_v22, %v875_v15  ;;  %v1870_v15 = vld [vmem:[#allocation5 + $0xa0] ss:$8 sps:$4 sm:$0xff]   ;;  %v1878_v18 = vld [vmem:[#allocation5 + $0xb4] ss:$8 sps:$4 sm:$0xff]   ;;  %v1884_v22 = vld [vmem:[#allocation5 + $0xc4] ss:$8 sps:$4 sm:$0xff]  }
 0x371   : > { %v905_v25 = vmax.f32 %v885_v23, %v894_v11  ;;  %1467 = vmatpush1.bf16.msra.mxu0 %v1840_v48  ;;  %v1864_v11 = vld [vmem:[#allocation5 + $0x90] ss:$8 sps:$4 sm:$0xff]   ;;  %v1887_v23 = vld [vmem:[#allocation5 + $0x144] ss:$8 sps:$4 sm:$0xff]  }
 0x372   : > { %v904_v27 = vmax.f32 %v884_v24, %v895_v19  ;;  %v912_v28 = vld [vmem:[#allocation3] ss:$2 sm:$0xff]  ;;  %1468 = vmatprep.subr.bf16.mxu0 %v1845_v49 }
 0x373   : > { %911 = vst.msk [vmem:[#allocation3 + $0x20] sm:$0x3] %vm910_vm7, %v905_v25  ;;  %v919_v31 = vrot.slane %v912_v28, 7  ;;  %v927_v35 = vrot.slane %v912_v28, 1  ;;  %v1881_v19 = vld [vmem:[#allocation5 + $0x134] ss:$8 sps:$4 sm:$0xff]  }
 0x374   : > { %909 = vst.msk [vmem:[#allocation3 + $0x18] sm:$0xff] %vm678_vm13, %v904_v27  ;;  %v1882_v24 = vld [vmem:[#allocation5 + $0xc0] ss:$8 sps:$4 sm:$0xff]   ;;  %v1893_v27 = vld [vmem:[#allocation5 + $0x154] ss:$8 sps:$4 sm:$0xff]  }
 0x375   : > { %1469 = vmatpush1.bf16.msra.mxu0 %v1843_v50  ;;  %v925_v63 = vsel %vm613_vm5, 0.0, %v919_v31  ;;  %v1885_v25 = vld [vmem:[#allocation5 + $0x140] ss:$8 sps:$4 sm:$0xff]  }
 0x376   : > { %1470 = vmatprep.subr.bf16.mxu0 %v1848_v51 }
 0x379   : > { %1471 = vmatpush1.bf16.msra.mxu0 %v1846_v52 }
 0x37a   : > { %v916_v29 = vld [vmem:[#allocation3 + $0x20] ss:$2 sm:$0x1]  ;;  %1472 = vmatprep.subr.bf16.mxu0 %v1851_v53 }
 0x37b   : > { %v2267_v30 = vld [vmem:[#allocation3 + $0x10] ss:$2 sm:$0xff]  ;;  %v930_v32 = vrot.slane %v916_v29, 1 }
 0x37c   : > { %v1811_v34 = vpack.i.bf16 %v2267_v30, %v912_v28  ;;  %v928_v36 = vrot.slane %v2267_v30, 1  ;;  %v920_v37 = vrot.slane %v2267_v30, 7  ;;  %v1888_v28 = vld [vmem:[#allocation5 + $0xd0] ss:$8 sps:$4 sm:$0xff]   ;;  %v1896_v30 = vld [vmem:[#allocation5 + $0xe4] ss:$8 sps:$4 sm:$0xff]  }
 0x37d   : > { %1473 = vmatpush1.bf16.msra.mxu0 %v1849_v54 }
 0x37e   : > { %1812 = vrot.lane.b32.xlu1 %v1811_v34, %s1960_s26  ;;  %v929_v38 = vsel %vm629_vm8, %v927_v35, %v928_v36  ;;  %v931_v39 = vsel %vm629_vm8, %v928_v36, %v930_v32  ;;  %v921_v40 = vsel %vm613_vm5, %v919_v31, %v920_v37  ;;  %1474 = vmatprep.subr.bf16.mxu0 %v1854_v55  ;;  %v1899_v31 = vld [vmem:[#allocation5 + $0x164] ss:$8 sps:$4 sm:$0xff]   ;;  %v1894_v32 = vld [vmem:[#allocation5 + $0xe0] ss:$8 sps:$4 sm:$0xff]   ;;  %v1902_v35 = vld [vmem:[#allocation5 + $0xf4] ss:$8 sps:$4 sm:$0xff]  }
 0x37f   : > { %v947_v43 = vpack.c.bf16 %v931_v39, %v929_v38  ;;  %v1897_v34 = vld [vmem:[#allocation5 + $0x160] ss:$8 sps:$4 sm:$0xff]   ;;  %v1905_v36 = vld [vmem:[#allocation5 + $0x174] ss:$8 sps:$4 sm:$0xff]   ;;  %v1903_v38 = vld [vmem:[#allocation5 + $0x170] ss:$8 sps:$4 sm:$0xff]  }
 0x380   : > { %v1636_v39 = vld [vmem:[%s2312_s6] ss:$0 sm:$0xff] }
 0x381   : > { %1649 = vmatprep.mubr.msk.bf16.mxu1 %vm678_vm13, %v947_v43  ;;  %1475 = vmatpush1.bf16.msra.mxu0 %v1852_v56 }
 0x382   : > { %938 = vrot.lane.b32.xlu1 %v916_v29, %s1960_s26  ;;  %1476 = vmatprep.subr.bf16.mxu0 %v1857_v33  ;;  %v1891_v29 = vld [vmem:[#allocation5 + $0x150] ss:$8 sps:$4 sm:$0xff]  }
 0x385   : > { %1477 = vmatpush1.bf16.msra.mxu0 %v1855_v57 }
 0x386   : > { %1478 = vmatprep.subr.bf16.mxu0 %v1860_v58 }
 0x389   : > { %1479 = vmatpush1.bf16.msra.mxu0 %v1858_v59 }
 0x38a   : > { %1480 = vmatprep.subr.bf16.mxu0 %v1866_v9 }
 0x38d   : > { %1481 = vmatpush1.bf16.msra.mxu0 %v1864_v11 }
 0x38e   : > { %1482 = vmatprep.subr.bf16.mxu0 %v1872_v13 }
 0x391   : > { %1483 = vmatpush1.bf16.msra.mxu0 %v1870_v15 }
 0x392   : > { %1484 = vmatprep.subr.bf16.mxu0 %v1878_v18 }
 0x395   : > { %1485 = vmatpush1.bf16.msra.mxu0 %v1876_v21 }
 0x396   : > { %1486 = vmatprep.subr.bf16.mxu0 %v1884_v22  ;;  %v1210_v22 = vld [vmem:[%s2314_s8] sm:$0x3] }
 0x399   : > { %1487 = vmatpush1.bf16.msra.mxu0 %v1882_v24  ;;  %v1215_v24 = vrot.slane %v1210_v22, %v2104_v20 }
 0x39a   : > { %1488 = vmatprep.subr.bf16.mxu0 %v1890_v26 }
 0x39d   : > { %1489 = vmatpush1.bf16.msra.mxu0 %v1888_v28 }
 0x39e   : > { %1490 = vmatprep.subr.bf16.mxu0 %v1896_v30 }
 0x3a1   : > { %1491 = vmatpush1.bf16.msra.mxu0 %v1894_v32 }
 0x3a2   : > { %1492 = vmatprep.subr.bf16.mxu0 %v1902_v35 }
 0x3f0   : > { %v1813_v60 = vpop.permute.xlu1 %1812 }
 0x3f1   : > { %v1815_v61 = vunpack.i.h.bf16 %v1813_v60  ;;  %v1814_v62 = vunpack.i.l.bf16 %v1813_v60 }
 0x3f3   : > { %v943_v1 = vsel %vm678_vm13, %v925_v63, %v1814_v62  ;;  %v944_v3 = vsel %vm678_vm13, %v921_v40, %v1815_v61 }
 0x3f4   : > { %v946_v5 = vpack.c.bf16 %v944_v3, %v943_v1  ;;  %v939_v6 = vpop.permute.xlu1 %938 }
 0x3f5   : > { %v945_v8 = vsel %vm678_vm13, %v920_v37, %v939_v6  ;;  %v1900_v37 = vld [vmem:[#allocation5 + $0xf0] ss:$8 sps:$4 sm:$0xff]   ;;  %vm1703_vm13 = vmpackc.low %vm847_vm1, %vm847_vm1 }
 0x3f6   : > { %1092 = vmatmul.mubr.bf16.vlgmr.msra.gmra.mrb[0].mxu1 %v946_v5  ;;  %v948_v2 = vpack.c.bf16 %v945_v8, %v945_v8  ;;  %1493 = vmatpush1.bf16.msra.mxu0 %v1900_v37 }
 0x3f7   : > { %1099 = vmatprep.mubr.bf16.mxu1 %v1961_v7  ;;  %1504 = vmatpush1.bf16.msra.mxu1 %v1861_v4 }
 0x3f8   : > { %1505 = vmatprep.subr.bf16.mxu1 %v1869_v10 }
 0x3fb   : > { %1506 = vmatpush1.bf16.msra.mxu1 %v1867_v12 }
 0x3fc   : > { %1507 = vmatprep.subr.bf16.mxu1 %v1875_v14 }
 0x3fe   : > { %1100 = vmatmul.mubr.bf16.gmra.mrb[4].mxu1 %v948_v2 }
 0x3ff   : > { %1535 = vmatprep.mubr.bf16.mxu1 %v1949_v0  ;;  %1508 = vmatpush1.bf16.msra.mxu1 %v1873_v16  ;;  %v1879_v0 = vld [vmem:[#allocation5 + $0x130] ss:$8 sps:$4 sm:$0xff]  }
 0x400   : > { %1509 = vmatprep.subr.bf16.mxu1 %v1881_v19 }
 0x403   : > { %1510 = vmatpush1.bf16.msra.mxu1 %v1879_v0 }
 0x404   : > { %1511 = vmatprep.subr.bf16.mxu1 %v1887_v23  ;;  %v1218_v23 = vsub.s32 1, %v2101_v17 }
 0x407   : > { %1512 = vmatpush1.bf16.msra.mxu1 %v1885_v25  ;;  %v1219_v25 = vrot.slane %v1210_v22, %v1218_v23 }
 0x408   : > { %1513 = vmatprep.subr.bf16.mxu1 %v1893_v27 }
 0x40b   : > { %1514 = vmatpush1.bf16.msra.mxu1 %v1891_v29 }
 0x40c   : > { %1515 = vmatprep.subr.bf16.mxu1 %v1899_v31 }
 0x40f   : > { %1516 = vmatpush1.bf16.msra.mxu1 %v1897_v34 }
 0x410   : > { %1517 = vmatprep.subr.bf16.mxu1 %v1905_v36 }
 0x413   : > { %1518 = vmatpush1.bf16.msra.mxu1 %v1903_v38 }
 0x4c9   : > { %v1093_v40 = vpop.f32.mrb[0].mxu1 }
 0x4ca   : > { %v1094_v41 = vadd.f32 %v1636_v39, %v1093_v40  ;;  %v1095_v42 = vpop.f32.mrb[1].mxu1 }
 0x4cb   : > { %v1096_v43 = vpop.f32.mrb[2].mxu1 }
 0x4cc   : > { %vm1107_vm9 = vcmp.ge.f32.partialorder %v1094_v41, 0.0  ;;  %v1110_v44 = vmul.f32 0.1, %v1094_v41  ;;  %v1097_v45 = vadd.f32 %v1636_v39, %v1096_v43  ;;  %v1098_v46 = vpop.f32.mrb[3].mxu1 }
 0x4ce   : > { %v1113_v47 = vsel %vm1107_vm9, %v1094_v41, %v1110_v44  ;;  %vm1108_vm10 = vcmp.ge.f32.partialorder %v1097_v45, 0.0  ;;  %v1111_v48 = vmul.f32 0.1, %v1097_v45 }
 0x4cf   : > { %v1118_v49 = vrot.slane %v1113_v47, 1  ;;  %v1125_v50 = vrot.slane %v1113_v47, 2  ;;  %v1132_v51 = vrot.slane %v1113_v47, 3  ;;  %v1140_v57 = vrot.slane %v1113_v47, 4 }
 0x4d0   : > { %v1114_v52 = vsel %vm1108_vm10, %v1097_v45, %v1111_v48 }
 0x4d1   : > { %v1119_v53 = vrot.slane %v1114_v52, 1  ;;  %v1126_v54 = vrot.slane %v1114_v52, 2  ;;  %v1133_v55 = vrot.slane %v1114_v52, 3  ;;  %v1141_v56 = vrot.slane %v1114_v52, 4  ;;  %v1101_v33 = vpop.f32.mrb[4].mxu1 }
 0x4d2   : > { %v1102_v58 = vadd.f32 %v1636_v39, %v1101_v33  ;;  %v1103_v59 = vpop.f32.mrb[5].mxu1 }
 0x4d3   : > { %v1120_v60 = vsel %vm629_vm8, %v1118_v49, %v1119_v53  ;;  %v1124_v61 = vmax.f32 %v1114_v52, %v1119_v53  ;;  %v1127_v62 = vsel %vm847_vm1, %v1125_v50, %v1126_v54  ;;  %v1134_v63 = vsel %vm640_vm12, %v1132_v51, %v1133_v55  ;;  %v1104_v1 = vpop.f32.mrb[6].mxu1  ;;  %vm1698_vm8 = vmneg %vm613_vm5 }
 0x4d4   : > { %v1123_v3 = vmax.f32 %v1113_v47, %v1120_v60  ;;  %v1142_v4 = vsel %vm886_vm2, %v1140_v57, %v1141_v56  ;;  %vm1109_vm11 = vcmp.ge.f32.partialorder %v1102_v58, 0.0  ;;  %v1112_v5 = vmul.f32 0.1, %v1102_v58  ;;  %v1105_v6 = vpop.f32.mrb[7].mxu1  ;;  %vm1700_vm12 = vmpackc.low %vm1698_vm8, %vm1698_vm8 }
 0x4d5   : > { %v1131_v7 = vmax.f32 %v1124_v61, %v1126_v54 }
 0x4d6   : > { %v1130_v8 = vmax.f32 %v1123_v3, %v1127_v62  ;;  %v1115_v2 = vsel %vm1109_vm11, %v1102_v58, %v1112_v5 }
 0x4d7   : > { %v1138_v9 = vmax.f32 %v1131_v7, %v1133_v55  ;;  %v1143_v10 = vrot.slane %v1115_v2, 4 }
 0x4d8   : > { %v1137_v11 = vmax.f32 %v1130_v8, %v1134_v63 }
 0x4d9   : > { %v1144_v12 = vsel %vm886_vm2, %v1141_v56, %v1143_v10 }
 0x4da   : > { %v1147_v13 = vmax.f32 %v1137_v11, %v1142_v4  ;;  %v1148_v14 = vmax.f32 %v1138_v9, %v1144_v12 }
 0x4dc   : > { %1149 = vst [vmem:[#allocation4] sm:$0xff] %v1147_v13  ;;  %1150 = vst [vmem:[#allocation4 + $0x8] sm:$0x1f] %v1148_v14 }
 0x4e3   : > { %v1151_v15 = vld [vmem:[#allocation4] ss:$2 sm:$0x7f] }
 0x4e4   : > { %v1153_v16 = vrot.slane %v1151_v15, 7  ;;  %v1156_v18 = vrot.slane %v1151_v15, 1  ;;  %v1160_v19 = vpack.c.bf16 %v1151_v15, %v1151_v15 }
 0x4e6   : > { %1494 = vmatprep.mubr.bf16.mxu0 %v1160_v19  ;;  %v1701_v21 = vpack.c.bf16 %v1153_v16, %v1153_v16  ;;  %v1704_v0 = vpack.c.bf16 %v1156_v18, %v1156_v18 }
 0x4e8   : > { %1702 = vmatmul.mubr.msk.bf16.vlgmr.msra.gmra.mrb[12].mxu0 %vm1700_vm12, %v1701_v21  ;;  %1705 = vmatmul.mubr.msk.bf16.vlgmr.msra.gmra.mrb[8].mxu1 %vm1703_vm13, %v1704_v0 }
 0x5bb   : > { %v1496_v26 = vpop.f32.mrb[12].mxu0  ;;  %v1537_v27 = vpop.f32.mrb[8].mxu1 }
 0x5bc   : > { %v1497_v28 = vadd.f32 %v1496_v26, %v1215_v24  ;;  %v1498_v29 = vpop.f32.mrb[13].mxu0  ;;  %v1539_v30 = vpop.f32.mrb[9].mxu1 }
 0x5bd   : > { %v1499_v31 = vadd.f32 %v1498_v29, %v1219_v25  ;;  %v1500_v32 = vpop.f32.mrb[14].mxu0  ;;  %v1541_v34 = vpop.f32.mrb[10].mxu1 }
 0x5be   : > { %v1538_v35 = vadd.f32 %v1537_v27, %v1497_v28  ;;  %v1501_v36 = vpop.f32.mrb[15].mxu0  ;;  %v1542_v37 = vpop.f32.mrb[11].mxu1 }
 0x5bf   : > { %v1540_v38 = vadd.f32 %v1539_v30, %v1499_v31 }
 0x5c0   : > { %vm1544_vm5 = vcmp.ge.f32.partialorder %v1538_v35, 0.0  ;;  %v1546_v17 = vmul.f32 0.1, %v1538_v35 }
 0x5c1   : > { %vm1545_vm14 = vcmp.ge.f32.partialorder %v1540_v38, 0.0  ;;  %v1547_v20 = vmul.f32 0.1, %v1540_v38 }
 0x5c2   : > { %v1548_v39 = vsel %vm1544_vm5, %v1538_v35, %v1546_v17 }
 0x5c3   : > { %1550 = vst [vmem:[%s341_s22] sm:$0x7f] %v1548_v39  ;;  %v1549_v40 = vsel %vm1545_vm14, %v1540_v38, %v1547_v20 }
 0x5c4   : > { %1551 = vst [vmem:[%s341_s22 + $0x8] sm:$0x7f] %v1549_v40 }
 0x5c5 PF: > { %s20_s30 = sadd.s32 1, %s1944_s30  }
 0x5c6   : > { %p17_p3 = scmp.ge.s32.totalorder %s20_s30, 4  }
 0x5c8   :  { %19 = sbr.rel (!%p17_p3) target bundleno = 1 (0x1), region = 97 }
 0x5cf   :  { %1573 = vsyncpa [#allocation6], 1 }
 0x5d0   :  { %1575 = vsyncpa [#allocation6 + $0x1], 1 }

</bundles_post_ra>
